<compile_context>
chip_gen: v7x
topology: tpu7x:2x2x1
jax: 0.10.0
libtpu: 0.0.40
codegen_flags: <defaults>
</compile_context>

<pallas_src>
import functools
import math

import jax
import jax.numpy as jnp
from jax.experimental import pallas as pl
from jax.experimental.pallas import tpu as pltpu

# Full-f32 matmuls so the Pallas kernels match the pure-JAX reference bitwise-closely.
jax.config.update("jax_default_matmul_precision", "highest")

EPS = 1e-6          # LayerNormalization eps (matches reference implementation)
NEG_INF = -1e9      # masked_fill value (matches reference implementation)
VMEM_LIMIT = 32 * 1024 * 1024   # safe on v5e/v6e (128 MiB) and v7x (64 MiB physical)
PRECISION = jax.lax.Precision.HIGHEST

# Matmul operand dtype.  float32 keeps the kernel within the f32 reference tolerance;
# flip to jnp.bfloat16 on v6e/v7x for MXU peak once tolerance is re-validated.
MATMUL_DTYPE = jnp.float32

_NN = (((1,), (0,)), ((), ()))   # (m,k) x (k,n) -> (m,n)
_NT = (((1,), (1,)), ((), ()))   # (m,k) x (n,k) -> (m,n)   (q @ k^T without transpose)


def _mm(a, b, dims):
    return jax.lax.dot_general(
        a.astype(MATMUL_DTYPE), b.astype(MATMUL_DTYPE), dims,
        preferred_element_type=jnp.float32, precision=PRECISION)


# --------------------------- in-kernel building blocks ----------------------------

def _ln2d(x, alpha, beta):
    """alpha * (x - mean) / (std + eps) + beta, unbiased std (torch semantics)."""
    d = x.shape[-1]
    mean = jnp.mean(x, axis=-1, keepdims=True)
    xc = x - mean
    var = jnp.sum(xc * xc, axis=-1, keepdims=True) * (1.0 / (d - 1))
    # Reciprocal goes to the EUP slot instead of a VPU divide.
    # TODO(synk): switch to approx=True after re-validating against the tolerance.
    inv = pl.reciprocal(jnp.sqrt(var) + EPS)
    return alpha * (xc * inv) + beta


def _mha2d(y, kv, mask2d, wq_ref, bq, wk_ref, bk, wv_ref, bv, wo_ref, bo, *, h, scale):
    """All-heads attention on 2-D (T, D) tiles; result is lane-dense (Tq, D)."""
    tq, d = y.shape
    dk = d // h
    q = _mm(y, wq_ref[...], _NN) + bq          # (Tq, D)
    k = _mm(kv, wk_ref[...], _NN) + bk         # (Tk, D)
    v = _mm(kv, wv_ref[...], _NN) + bv         # (Tk, D)
    masked = mask2d == 0                       # (1|Tq, Tk), broadcast over rows/heads
    acc = jnp.zeros((tq, d), jnp.float32)
    for hh in range(h):                        # static unroll; heads never hit HBM
        sl = slice(hh * dk, (hh + 1) * dk)
        s = _mm(q[:, sl], k[:, sl], _NT) * scale          # (Tq, Tk)
        s = jnp.where(masked, NEG_INF, s)
        s = s - jnp.max(s, axis=-1, keepdims=True)
        p = jnp.exp(s)
        p = p * pl.reciprocal(jnp.sum(p, axis=-1, keepdims=True))
        o_h = _mm(p, v[:, sl], _NN)                       # (Tq, dk)
        # concat(heads) @ Wo  ==  sum_h  o_h @ Wo[h*dk:(h+1)*dk, :]
        acc = acc + _mm(o_h, wo_ref[sl, :], _NN)
    return acc + bo


# --------------------------------- Pallas kernels ----------------------------------

def _self_attn_kernel(x_ref, m_ref, a_ref, b_ref, wq, bq, wk, bk, wv, bv, wo, bo,
                      o_ref, *, h, scale):
    # x: (1, Tq, D); m: (1, Mq, Tq) int32; one batch element per grid step.
    x = x_ref[0].astype(jnp.float32)
    y = _ln2d(x, a_ref[...], b_ref[...])
    out = _mha2d(y, y, m_ref[0], wq, bq[...], wk, bk[...], wv, bv[...], wo, bo[...],
                 h=h, scale=scale)
    o_ref[0] = (x + out).astype(o_ref.dtype)          # residual add fused as epilogue


def _cross_attn_kernel(x_ref, kv_ref, m_ref, a_ref, b_ref, wq, bq, wk, bk, wv, bv,
                       wo, bo, o_ref, *, h, scale):
    x = x_ref[0].astype(jnp.float32)
    y = _ln2d(x, a_ref[...], b_ref[...])
    kv = kv_ref[0].astype(jnp.float32)                # encoder output (not normalized)
    out = _mha2d(y, kv, m_ref[0], wq, bq[...], wk, bk[...], wv, bv[...], wo, bo[...],
                 h=h, scale=scale)
    o_ref[0] = (x + out).astype(o_ref.dtype)


def _ffn_kernel(x_ref, a_ref, b_ref, w1_ref, b1_ref, w2_ref, b2_ref, o_ref):
    # Fused LN -> W1 -> ReLU -> W2 -> residual; (tm, d_ff) hidden stays in VMEM.
    x = x_ref[...].astype(jnp.float32)
    y = _ln2d(x, a_ref[...], b_ref[...])
    hid = jnp.maximum(_mm(y, w1_ref[...], _NN) + b1_ref[...], 0.0)
    out = _mm(hid, w2_ref[...], _NN) + b2_ref[...]
    o_ref[...] = (x + out).astype(o_ref.dtype)


def _ln_kernel(x_ref, a_ref, b_ref, o_ref):
    o_ref[...] = _ln2d(x_ref[...].astype(jnp.float32),
                       a_ref[...], b_ref[...]).astype(o_ref.dtype)


# ------------------------------------ wrappers --------------------------------------

def _row_tile(n, target=256):
    """Largest row tile that is a multiple of 8, divides n, and (when possible) leaves
    >= 2 grid steps so v7x's second TensorCore is used."""
    if n % 16 == 0:
        for cand in (target, 128, 64, 32, 16, 8):
            if cand % 8 == 0 and cand <= n // 2 and n % cand == 0:
                return cand
    return n


def _mosaic_params():
    return pltpu.CompilerParams(dimension_semantics=("parallel",),
                                vmem_limit_bytes=VMEM_LIMIT)


def attention_sublayer(ap, ln_a, ln_b, x, kv, mask, h):
    """x + MHA(LN(x), kv or LN(x), mask) as a single fused pallas_call (grid over batch)."""
    b, tq, d = x.shape
    self_attn = kv is None
    tk = tq if self_attn else kv.shape[1]
    scale = 1.0 / math.sqrt(d // h)

    args = [x]
    in_specs = [pl.BlockSpec((1, tq, d), lambda i: (i, 0, 0))]
    if not self_attn:
        args.append(kv)
        in_specs.append(pl.BlockSpec((1, tk, d), lambda i: (i, 0, 0)))

    mb, mq, mtk = mask.shape                 # natural shape, no per-head broadcast
    assert mtk == tk
    mask_map = (lambda i: (i, 0, 0)) if mb > 1 else (lambda i: (0, 0, 0))
    args.append(mask)
    in_specs.append(pl.BlockSpec((1, mq, tk), mask_map))

    def add_param(arr):                      # all params are 2-D; fetched once (block 0)
        args.append(arr)
        in_specs.append(pl.BlockSpec(arr.shape, lambda i: (0, 0)))

    add_param(ln_a.reshape(1, d))
    add_param(ln_b.reshape(1, d))
    for nm in ("q", "k", "v", "o"):
        add_param(ap["w_" + nm])
        add_param(ap["b_" + nm].reshape(1, d))

    kern = _self_attn_kernel if self_attn else _cross_attn_kernel
    flops = 2 * b * (3 * tk * d * d + tq * d * d + 2 * tq * tk * d)
    bytes_accessed = 4 * (b * (2 * tq * d + tk * d + mq * tk) + 4 * d * d + 5 * d)
    return pl.pallas_call(
        functools.partial(kern, h=h, scale=scale),
        out_shape=jax.ShapeDtypeStruct((b, tq, d), x.dtype),
        grid=(b,),
        in_specs=in_specs,
        out_specs=pl.BlockSpec((1, tq, d), lambda i: (i, 0, 0)),
        compiler_params=_mosaic_params(),
        cost_estimate=pl.CostEstimate(flops=int(flops),
                                      transcendentals=int(b * h * tq * tk),
                                      bytes_accessed=int(bytes_accessed)),
    )(*args)


def ffn_sublayer(p, x):
    """x + W2(ReLU(W1(LN(x)))) as a single fused pallas_call over row tiles."""
    b, t, d = x.shape
    n = b * t
    dff = p["w1"].shape[1]
    tm = _row_tile(n)
    flops = 4 * n * d * dff
    bytes_accessed = 4 * (2 * n * d + 2 * d * dff + 2 * d + dff + 2 * d)
    out = pl.pallas_call(
        _ffn_kernel,
        out_shape=jax.ShapeDtypeStruct((n, d), x.dtype),
        grid=(n // tm,),
        in_specs=[
            pl.BlockSpec((tm, d), lambda i: (i, 0)),
            pl.BlockSpec((1, d), lambda i: (0, 0)),
            pl.BlockSpec((1, d), lambda i: (0, 0)),
            pl.BlockSpec((d, dff), lambda i: (0, 0)),
            pl.BlockSpec((1, dff), lambda i: (0, 0)),
            pl.BlockSpec((dff, d), lambda i: (0, 0)),
            pl.BlockSpec((1, d), lambda i: (0, 0)),
        ],
        out_specs=pl.BlockSpec((tm, d), lambda i: (i, 0)),
        compiler_params=_mosaic_params(),
        cost_estimate=pl.CostEstimate(flops=int(flops), transcendentals=int(n * dff),
                                      bytes_accessed=int(bytes_accessed)),
    )(x.reshape(n, d),
      p["norm3_a"].reshape(1, d), p["norm3_b"].reshape(1, d),
      p["w1"], p["b1"].reshape(1, dff), p["w2"], p["b2"].reshape(1, d))
    return out.reshape(b, t, d)


def final_layer_norm(x, alpha, beta):
    b, t, d = x.shape
    n = b * t
    tm = _row_tile(n)
    out = pl.pallas_call(
        _ln_kernel,
        out_shape=jax.ShapeDtypeStruct((n, d), x.dtype),
        grid=(n // tm,),
        in_specs=[
            pl.BlockSpec((tm, d), lambda i: (i, 0)),
            pl.BlockSpec((1, d), lambda i: (0, 0)),
            pl.BlockSpec((1, d), lambda i: (0, 0)),
        ],
        out_specs=pl.BlockSpec((tm, d), lambda i: (i, 0)),
        compiler_params=_mosaic_params(),
    )(x.reshape(n, d), alpha.reshape(1, d), beta.reshape(1, d))
    return out.reshape(b, t, d)


def decoder_forward(params, x, encoder_output, src_mask, tgt_mask, h):
    # Masks kept in natural (un-broadcast) shape as compact int32 — the kernel
    # reuses the same block across heads, no H-fold float32 duplication in HBM.
    src_m = (src_mask[:, 0] != 0).astype(jnp.int32)   # (B, 1,  T_src)
    tgt_m = (tgt_mask[:, 0] != 0).astype(jnp.int32)   # (B, T_tgt, T_tgt)
    for p in params["layers"]:
        # TODO(synk): dropout inside ResidualConnection/attention/FFN is a no-op (eval mode).
        x = attention_sublayer(p["self_attn"], p["norm1_a"], p["norm1_b"], x, None, tgt_m, h)
        x = attention_sublayer(p["cross_attn"], p["norm2_a"], p["norm2_b"], x,
                               encoder_output, src_m, h)
        x = ffn_sublayer(p, x)
    return final_layer_norm(x, params["norm_a"], params["norm_b"])


# ------------------------------ pure-JAX reference ----------------------------------

def _ref_ln(x, a, b):
    d = x.shape[-1]
    mean = x.mean(-1, keepdims=True)
    xc = x - mean
    std = jnp.sqrt((xc * xc).sum(-1, keepdims=True) / (d - 1))
    return a * xc / (std + EPS) + b


def _ref_mha(p, q_in, k_in, v_in, mask, h):
    b, tq, d = q_in.shape
    tk = k_in.shape[1]
    dk = d // h
    q = (q_in @ p["w_q"] + p["b_q"]).reshape(b, tq, h, dk).transpose(0, 2, 1, 3)
    k = (k_in @ p["w_k"] + p["b_k"]).reshape(b, tk, h, dk).transpose(0, 2, 1, 3)
    v = (v_in @ p["w_v"] + p["b_v"]).reshape(b, tk, h, dk).transpose(0, 2, 1, 3)
    s = jnp.einsum("bhqd,bhkd->bhqk", q, k) / (dk ** 0.5)
    s = jnp.where(mask == 0, -1e9, s)
    p_att = jax.nn.softmax(s, axis=-1)
    o = jnp.einsum("bhqk,bhkd->bhqd", p_att, v).transpose(0, 2, 1, 3).reshape(b, tq, d)
    return o @ p["w_o"] + p["b_o"]


def _ref_decoder(params, x, enc, src_mask, tgt_mask, h):
    for p in params["layers"]:
        y = _ref_ln(x, p["norm1_a"], p["norm1_b"])
        x = x + _ref_mha(p["self_attn"], y, y, y, tgt_mask, h)
        y = _ref_ln(x, p["norm2_a"], p["norm2_b"])
        x = x + _ref_mha(p["cross_attn"], y, enc, enc, src_mask, h)
        y = _ref_ln(x, p["norm3_a"], p["norm3_b"])
        x = x + (jnp.maximum(y @ p["w1"] + p["b1"], 0.0) @ p["w2"] + p["b2"])
    return _ref_ln(x, params["norm_a"], params["norm_b"])


# --------------------------------- param init ---------------------------------------

def init_params(key, n_layers, d_model, d_ff):
    def lin(k, din, dout):
        kw, kb = jax.random.split(k)
        return (jax.random.normal(kw, (din, dout), jnp.float32) / jnp.sqrt(din),
                0.1 * jax.random.normal(kb, (dout,), jnp.float32))

    layers = []
    for i in range(n_layers):
        ks = jax.random.split(jax.random.fold_in(key, i), 10)
        attn_s, attn_c = {}, {}
        for j, name in enumerate(["q", "k", "v", "o"]):
            attn_s["w_" + name], attn_s["b_" + name] = lin(ks[j], d_model, d_model)
            attn_c["w_" + name], attn_c["b_" + name] = lin(ks[4 + j], d_model, d_model)
        w1, b1 = lin(ks[8], d_model, d_ff)
        w2, b2 = lin(ks[9], d_ff, d_model)
        layers.append(dict(
            self_attn=attn_s, cross_attn=attn_c,
            w1=w1, b1=b1, w2=w2, b2=b2,
            norm1_a=jnp.ones((d_model,), jnp.float32), norm1_b=jnp.zeros((d_model,), jnp.float32),
            norm2_a=jnp.ones((d_model,), jnp.float32), norm2_b=jnp.zeros((d_model,), jnp.float32),
            norm3_a=jnp.ones((d_model,), jnp.float32), norm3_b=jnp.zeros((d_model,), jnp.float32),
        ))
    return dict(layers=layers,
                norm_a=jnp.ones((d_model,), jnp.float32),
                norm_b=jnp.zeros((d_model,), jnp.float32))


# ------------------------------------- main ------------------------------------------

if __name__ == "__main__":
    B, T_TGT, T_SRC, D, H, D_FF, N_LAYERS = 2, 8, 8, 32, 4, 64, 2

    key = jax.random.PRNGKey(0)
    k_x, k_enc, k_p = jax.random.split(key, 3)
    x = jax.random.normal(k_x, (B, T_TGT, D), jnp.float32)
    enc = jax.random.normal(k_enc, (B, T_SRC, D), jnp.float32)

    # src_mask: (B, 1, 1, T_src) all ones; tgt_mask: (B, 1, T_tgt, T_tgt) causal.
    src_mask = jnp.ones((B, 1, 1, T_SRC), jnp.float32)
    tgt_mask = jnp.tril(jnp.ones((T_TGT, T_TGT), jnp.float32))[None, None]
    tgt_mask = jnp.broadcast_to(tgt_mask, (B, 1, T_TGT, T_TGT))

    params = init_params(k_p, N_LAYERS, D, D_FF)

    out = decoder_forward(params, x, enc, src_mask, tgt_mask, H)
    out = jax.block_until_ready(out)

    ref = jax.block_until_ready(_ref_decoder(params, x, enc, src_mask, tgt_mask, H))
    assert out.shape == (B, T_TGT, D)
    assert jnp.allclose(out, ref, atol=2e-2, rtol=2e-2), "mismatch vs JAX reference"

    print("KERNEL_OK")
</pallas_src>

<mosaic_0001>
module attributes {stable_mosaic.version = 11 : i64} {
  func.func @_self_attn_kernel(%arg0: i32, %arg1: memref<1x8x32xf32, #tpu.memory_space<vmem>>, %arg2: memref<1x8x8xi32, #tpu.memory_space<vmem>>, %arg3: memref<1x32xf32, #tpu.memory_space<vmem>>, %arg4: memref<1x32xf32, #tpu.memory_space<vmem>>, %arg5: memref<32x32xf32, #tpu.memory_space<vmem>>, %arg6: memref<1x32xf32, #tpu.memory_space<vmem>>, %arg7: memref<32x32xf32, #tpu.memory_space<vmem>>, %arg8: memref<1x32xf32, #tpu.memory_space<vmem>>, %arg9: memref<32x32xf32, #tpu.memory_space<vmem>>, %arg10: memref<1x32xf32, #tpu.memory_space<vmem>>, %arg11: memref<32x32xf32, #tpu.memory_space<vmem>>, %arg12: memref<1x32xf32, #tpu.memory_space<vmem>>, %arg13: memref<1x8x32xf32, #tpu.memory_space<vmem>>) attributes {dimension_semantics = [#tpu.dimension_semantics<parallel>], iteration_bounds = array<i64: 2>, scalar_prefetch = 0 : i64, scratch_operands = 0 : i64, tpu.core_type = #tpu.core_type<tc>, window_params = [{transform_indices = @transform_0, window_bounds = array<i64: 1, 8, 32>}, {transform_indices = @transform_1, window_bounds = array<i64: 1, 8, 8>}, {pipeline_mode = #tpu.pipeline_mode<synchronous>, transform_indices = @transform_2, window_bounds = array<i64: 1, 32>}, {pipeline_mode = #tpu.pipeline_mode<synchronous>, transform_indices = @transform_3, window_bounds = array<i64: 1, 32>}, {pipeline_mode = #tpu.pipeline_mode<synchronous>, transform_indices = @transform_4, window_bounds = array<i64: 32, 32>}, {pipeline_mode = #tpu.pipeline_mode<synchronous>, transform_indices = @transform_5, window_bounds = array<i64: 1, 32>}, {pipeline_mode = #tpu.pipeline_mode<synchronous>, transform_indices = @transform_6, window_bounds = array<i64: 32, 32>}, {pipeline_mode = #tpu.pipeline_mode<synchronous>, transform_indices = @transform_7, window_bounds = array<i64: 1, 32>}, {pipeline_mode = #tpu.pipeline_mode<synchronous>, transform_indices = @transform_8, window_bounds = array<i64: 32, 32>}, {pipeline_mode = #tpu.pipeline_mode<synchronous>, transform_indices = @transform_9, window_bounds = array<i64: 1, 32>}, {pipeline_mode = #tpu.pipeline_mode<synchronous>, transform_indices = @transform_10, window_bounds = array<i64: 32, 32>}, {pipeline_mode = #tpu.pipeline_mode<synchronous>, transform_indices = @transform_11, window_bounds = array<i64: 1, 32>}, {transform_indices = @transform_12, window_bounds = array<i64: 1, 8, 32>}]} {
    %c0 = arith.constant 0 : index
    %c0_0 = arith.constant 0 : index
    %c0_1 = arith.constant 0 : index
    %0 = vector.load %arg1[%c0, %c0_0, %c0_1] : memref<1x8x32xf32, #tpu.memory_space<vmem>>, vector<1x8x32xf32>
    %1 = vector.shape_cast %0 : vector<1x8x32xf32> to vector<8x32xf32>
    %c0_2 = arith.constant 0 : index
    %c0_3 = arith.constant 0 : index
    %2 = vector.load %arg3[%c0_2, %c0_3] : memref<1x32xf32, #tpu.memory_space<vmem>>, vector<1x32xf32>
    %c0_4 = arith.constant 0 : index
    %c0_5 = arith.constant 0 : index
    %3 = vector.load %arg4[%c0_4, %c0_5] : memref<1x32xf32, #tpu.memory_space<vmem>>, vector<1x32xf32>
    %cst = arith.constant dense<0.000000e+00> : vector<8xf32>
    %4 = vector.multi_reduction <add>, %1, %cst [1] : vector<8x32xf32> to vector<8xf32>
    %5 = vector.shape_cast %4 : vector<8xf32> to vector<8x1xf32>
    %cst_6 = arith.constant 3.200000e+01 : f32
    %6 = vector.broadcast %cst_6 : f32 to vector<8x1xf32>
    %7 = arith.divf %5, %6 : vector<8x1xf32>
    %8 = vector.broadcast %7 : vector<8x1xf32> to vector<8x32xf32>
    %9 = arith.subf %1, %8 : vector<8x32xf32>
    %10 = arith.mulf %9, %9 : vector<8x32xf32>
    %cst_7 = arith.constant dense<0.000000e+00> : vector<8xf32>
    %11 = vector.multi_reduction <add>, %10, %cst_7 [1] : vector<8x32xf32> to vector<8xf32>
    %12 = vector.shape_cast %11 : vector<8xf32> to vector<8x1xf32>
    %cst_8 = arith.constant 0.0322580636 : f32
    %13 = vector.broadcast %cst_8 : f32 to vector<8x1xf32>
    %14 = arith.mulf %12, %13 : vector<8x1xf32>
    %15 = math.sqrt %14 : vector<8x1xf32>
    %cst_9 = arith.constant 9.99999997E-7 : f32
    %16 = vector.broadcast %cst_9 : f32 to vector<8x1xf32>
    %17 = arith.addf %15, %16 : vector<8x1xf32>
    %18 = tpu.reciprocal %17 : vector<8x1xf32> -> vector<8x1xf32>
    %19 = vector.broadcast %18 : vector<8x1xf32> to vector<8x32xf32>
    %20 = arith.mulf %9, %19 : vector<8x32xf32>
    %21 = vector.broadcast %2 : vector<1x32xf32> to vector<8x32xf32>
    %22 = arith.mulf %21, %20 : vector<8x32xf32>
    %23 = vector.broadcast %3 : vector<1x32xf32> to vector<8x32xf32>
    %24 = arith.addf %22, %23 : vector<8x32xf32>
    %c0_10 = arith.constant 0 : index
    %c0_11 = arith.constant 0 : index
    %c0_12 = arith.constant 0 : index
    %25 = vector.load %arg2[%c0_10, %c0_11, %c0_12] : memref<1x8x8xi32, #tpu.memory_space<vmem>>, vector<1x8x8xi32>
    %26 = vector.shape_cast %25 : vector<1x8x8xi32> to vector<8x8xi32>
    %c0_13 = arith.constant 0 : index
    %c0_14 = arith.constant 0 : index
    %27 = vector.load %arg6[%c0_13, %c0_14] : memref<1x32xf32, #tpu.memory_space<vmem>>, vector<1x32xf32>
    %c0_15 = arith.constant 0 : index
    %c0_16 = arith.constant 0 : index
    %28 = vector.load %arg8[%c0_15, %c0_16] : memref<1x32xf32, #tpu.memory_space<vmem>>, vector<1x32xf32>
    %c0_17 = arith.constant 0 : index
    %c0_18 = arith.constant 0 : index
    %29 = vector.load %arg10[%c0_17, %c0_18] : memref<1x32xf32, #tpu.memory_space<vmem>>, vector<1x32xf32>
    %c0_19 = arith.constant 0 : index
    %c0_20 = arith.constant 0 : index
    %30 = vector.load %arg12[%c0_19, %c0_20] : memref<1x32xf32, #tpu.memory_space<vmem>>, vector<1x32xf32>
    %c0_21 = arith.constant 0 : index
    %c0_22 = arith.constant 0 : index
    %31 = vector.load %arg5[%c0_21, %c0_22] : memref<32x32xf32, #tpu.memory_space<vmem>>, vector<32x32xf32>
    %cst_23 = arith.constant dense<0.000000e+00> : vector<8x32xf32>
    %32 = tpu.matmul %24, %31, %cst_23 {dimension_numbers = #tpu.dot_dimension_numbers<[1], [0], [0], [1], [0, 0, 1, 1], [], []>, precision = #tpu.contract_precision<fp32>} : vector<8x32xf32>, vector<32x32xf32>, vector<8x32xf32> -> vector<8x32xf32>
    %33 = vector.broadcast %27 : vector<1x32xf32> to vector<8x32xf32>
    %34 = arith.addf %32, %33 : vector<8x32xf32>
    %c0_24 = arith.constant 0 : index
    %c0_25 = arith.constant 0 : index
    %35 = vector.load %arg7[%c0_24, %c0_25] : memref<32x32xf32, #tpu.memory_space<vmem>>, vector<32x32xf32>
    %cst_26 = arith.constant dense<0.000000e+00> : vector<8x32xf32>
    %36 = tpu.matmul %24, %35, %cst_26 {dimension_numbers = #tpu.dot_dimension_numbers<[1], [0], [0], [1], [0, 0, 1, 1], [], []>, precision = #tpu.contract_precision<fp32>} : vector<8x32xf32>, vector<32x32xf32>, vector<8x32xf32> -> vector<8x32xf32>
    %37 = vector.broadcast %28 : vector<1x32xf32> to vector<8x32xf32>
    %38 = arith.addf %36, %37 : vector<8x32xf32>
    %c0_27 = arith.constant 0 : index
    %c0_28 = arith.constant 0 : index
    %39 = vector.load %arg9[%c0_27, %c0_28] : memref<32x32xf32, #tpu.memory_space<vmem>>, vector<32x32xf32>
    %cst_29 = arith.constant dense<0.000000e+00> : vector<8x32xf32>
    %40 = tpu.matmul %24, %39, %cst_29 {dimension_numbers = #tpu.dot_dimension_numbers<[1], [0], [0], [1], [0, 0, 1, 1], [], []>, precision = #tpu.contract_precision<fp32>} : vector<8x32xf32>, vector<32x32xf32>, vector<8x32xf32> -> vector<8x32xf32>
    %41 = vector.broadcast %29 : vector<1x32xf32> to vector<8x32xf32>
    %42 = arith.addf %40, %41 : vector<8x32xf32>
    %c0_i32 = arith.constant 0 : i32
    %43 = vector.broadcast %c0_i32 : i32 to vector<8x8xi32>
    %44 = arith.cmpi eq, %26, %43 : vector<8x8xi32>
    %cst_30 = arith.constant 0.000000e+00 : f32
    %45 = vector.broadcast %cst_30 : f32 to vector<8x32xf32>
    %46 = vector.extract_strided_slice %34 {offsets = [0, 0], sizes = [8, 8], strides = [1, 1]} : vector<8x32xf32> to vector<8x8xf32>
    %47 = vector.extract_strided_slice %38 {offsets = [0, 0], sizes = [8, 8], strides = [1, 1]} : vector<8x32xf32> to vector<8x8xf32>
    %cst_31 = arith.constant dense<0.000000e+00> : vector<8x8xf32>
    %48 = tpu.matmul %46, %47, %cst_31 {dimension_numbers = #tpu.dot_dimension_numbers<[1], [1], [0], [0], [0, 0, 1, 0], [], []>, precision = #tpu.contract_precision<fp32>} : vector<8x8xf32>, vector<8x8xf32>, vector<8x8xf32> -> vector<8x8xf32>
    %cst_32 = arith.constant 0.353553385 : f32
    %49 = vector.broadcast %cst_32 : f32 to vector<8x8xf32>
    %50 = arith.mulf %48, %49 : vector<8x8xf32>
    %cst_33 = arith.constant -1.000000e+09 : f32
    %51 = vector.broadcast %cst_33 : f32 to vector<8x8xf32>
    %52 = arith.select %44, %51, %50 : vector<8x8xi1>, vector<8x8xf32>
    %cst_34 = arith.constant dense<0xFF800000> : vector<8xf32>
    %53 = vector.multi_reduction <maximumf>, %52, %cst_34 [1] : vector<8x8xf32> to vector<8xf32>
    %54 = vector.shape_cast %53 : vector<8xf32> to vector<8x1xf32>
    %55 = vector.broadcast %54 : vector<8x1xf32> to vector<8x8xf32>
    %56 = arith.subf %52, %55 : vector<8x8xf32>
    %57 = math.exp %56 : vector<8x8xf32>
    %cst_35 = arith.constant dense<0.000000e+00> : vector<8xf32>
    %58 = vector.multi_reduction <add>, %57, %cst_35 [1] : vector<8x8xf32> to vector<8xf32>
    %59 = vector.shape_cast %58 : vector<8xf32> to vector<8x1xf32>
    %60 = tpu.reciprocal %59 : vector<8x1xf32> -> vector<8x1xf32>
    %61 = vector.broadcast %60 : vector<8x1xf32> to vector<8x8xf32>
    %62 = arith.mulf %57, %61 : vector<8x8xf32>
    %63 = vector.extract_strided_slice %42 {offsets = [0, 0], sizes = [8, 8], strides = [1, 1]} : vector<8x32xf32> to vector<8x8xf32>
    %cst_36 = arith.constant dense<0.000000e+00> : vector<8x8xf32>
    %64 = tpu.matmul %62, %63, %cst_36 {dimension_numbers = #tpu.dot_dimension_numbers<[1], [0], [0], [1], [0, 0, 1, 1], [], []>, precision = #tpu.contract_precision<fp32>} : vector<8x8xf32>, vector<8x8xf32>, vector<8x8xf32> -> vector<8x8xf32>
    %c0_37 = arith.constant 0 : index
    %c0_38 = arith.constant 0 : index
    %65 = vector.load %arg11[%c0_37, %c0_38] : memref<32x32xf32, #tpu.memory_space<vmem>>, vector<8x32xf32>
    %cst_39 = arith.constant dense<0.000000e+00> : vector<8x32xf32>
    %66 = tpu.matmul %64, %65, %cst_39 {dimension_numbers = #tpu.dot_dimension_numbers<[1], [0], [0], [1], [0, 0, 1, 1], [], []>, precision = #tpu.contract_precision<fp32>} : vector<8x8xf32>, vector<8x32xf32>, vector<8x32xf32> -> vector<8x32xf32>
    %67 = arith.addf %45, %66 : vector<8x32xf32>
    %68 = vector.extract_strided_slice %34 {offsets = [0, 8], sizes = [8, 8], strides = [1, 1]} : vector<8x32xf32> to vector<8x8xf32>
    %69 = vector.extract_strided_slice %38 {offsets = [0, 8], sizes = [8, 8], strides = [1, 1]} : vector<8x32xf32> to vector<8x8xf32>
    %cst_40 = arith.constant dense<0.000000e+00> : vector<8x8xf32>
    %70 = tpu.matmul %68, %69, %cst_40 {dimension_numbers = #tpu.dot_dimension_numbers<[1], [1], [0], [0], [0, 0, 1, 0], [], []>, precision = #tpu.contract_precision<fp32>} : vector<8x8xf32>, vector<8x8xf32>, vector<8x8xf32> -> vector<8x8xf32>
    %cst_41 = arith.constant 0.353553385 : f32
    %71 = vector.broadcast %cst_41 : f32 to vector<8x8xf32>
    %72 = arith.mulf %70, %71 : vector<8x8xf32>
    %cst_42 = arith.constant -1.000000e+09 : f32
    %73 = vector.broadcast %cst_42 : f32 to vector<8x8xf32>
    %74 = arith.select %44, %73, %72 : vector<8x8xi1>, vector<8x8xf32>
    %cst_43 = arith.constant dense<0xFF800000> : vector<8xf32>
    %75 = vector.multi_reduction <maximumf>, %74, %cst_43 [1] : vector<8x8xf32> to vector<8xf32>
    %76 = vector.shape_cast %75 : vector<8xf32> to vector<8x1xf32>
    %77 = vector.broadcast %76 : vector<8x1xf32> to vector<8x8xf32>
    %78 = arith.subf %74, %77 : vector<8x8xf32>
    %79 = math.exp %78 : vector<8x8xf32>
    %cst_44 = arith.constant dense<0.000000e+00> : vector<8xf32>
    %80 = vector.multi_reduction <add>, %79, %cst_44 [1] : vector<8x8xf32> to vector<8xf32>
    %81 = vector.shape_cast %80 : vector<8xf32> to vector<8x1xf32>
    %82 = tpu.reciprocal %81 : vector<8x1xf32> -> vector<8x1xf32>
    %83 = vector.broadcast %82 : vector<8x1xf32> to vector<8x8xf32>
    %84 = arith.mulf %79, %83 : vector<8x8xf32>
    %85 = vector.extract_strided_slice %42 {offsets = [0, 8], sizes = [8, 8], strides = [1, 1]} : vector<8x32xf32> to vector<8x8xf32>
    %cst_45 = arith.constant dense<0.000000e+00> : vector<8x8xf32>
    %86 = tpu.matmul %84, %85, %cst_45 {dimension_numbers = #tpu.dot_dimension_numbers<[1], [0], [0], [1], [0, 0, 1, 1], [], []>, precision = #tpu.contract_precision<fp32>} : vector<8x8xf32>, vector<8x8xf32>, vector<8x8xf32> -> vector<8x8xf32>
    %c8 = arith.constant 8 : index
    %c0_46 = arith.constant 0 : index
    %87 = vector.load %arg11[%c8, %c0_46] : memref<32x32xf32, #tpu.memory_space<vmem>>, vector<8x32xf32>
    %cst_47 = arith.constant dense<0.000000e+00> : vector<8x32xf32>
    %88 = tpu.matmul %86, %87, %cst_47 {dimension_numbers = #tpu.dot_dimension_numbers<[1], [0], [0], [1], [0, 0, 1, 1], [], []>, precision = #tpu.contract_precision<fp32>} : vector<8x8xf32>, vector<8x32xf32>, vector<8x32xf32> -> vector<8x32xf32>
    %89 = arith.addf %67, %88 : vector<8x32xf32>
    %90 = vector.extract_strided_slice %34 {offsets = [0, 16], sizes = [8, 8], strides = [1, 1]} : vector<8x32xf32> to vector<8x8xf32>
    %91 = vector.extract_strided_slice %38 {offsets = [0, 16], sizes = [8, 8], strides = [1, 1]} : vector<8x32xf32> to vector<8x8xf32>
    %cst_48 = arith.constant dense<0.000000e+00> : vector<8x8xf32>
    %92 = tpu.matmul %90, %91, %cst_48 {dimension_numbers = #tpu.dot_dimension_numbers<[1], [1], [0], [0], [0, 0, 1, 0], [], []>, precision = #tpu.contract_precision<fp32>} : vector<8x8xf32>, vector<8x8xf32>, vector<8x8xf32> -> vector<8x8xf32>
    %cst_49 = arith.constant 0.353553385 : f32
    %93 = vector.broadcast %cst_49 : f32 to vector<8x8xf32>
    %94 = arith.mulf %92, %93 : vector<8x8xf32>
    %cst_50 = arith.constant -1.000000e+09 : f32
    %95 = vector.broadcast %cst_50 : f32 to vector<8x8xf32>
    %96 = arith.select %44, %95, %94 : vector<8x8xi1>, vector<8x8xf32>
    %cst_51 = arith.constant dense<0xFF800000> : vector<8xf32>
    %97 = vector.multi_reduction <maximumf>, %96, %cst_51 [1] : vector<8x8xf32> to vector<8xf32>
    %98 = vector.shape_cast %97 : vector<8xf32> to vector<8x1xf32>
    %99 = vector.broadcast %98 : vector<8x1xf32> to vector<8x8xf32>
    %100 = arith.subf %96, %99 : vector<8x8xf32>
    %101 = math.exp %100 : vector<8x8xf32>
    %cst_52 = arith.constant dense<0.000000e+00> : vector<8xf32>
    %102 = vector.multi_reduction <add>, %101, %cst_52 [1] : vector<8x8xf32> to vector<8xf32>
    %103 = vector.shape_cast %102 : vector<8xf32> to vector<8x1xf32>
    %104 = tpu.reciprocal %103 : vector<8x1xf32> -> vector<8x1xf32>
    %105 = vector.broadcast %104 : vector<8x1xf32> to vector<8x8xf32>
    %106 = arith.mulf %101, %105 : vector<8x8xf32>
    %107 = vector.extract_strided_slice %42 {offsets = [0, 16], sizes = [8, 8], strides = [1, 1]} : vector<8x32xf32> to vector<8x8xf32>
    %cst_53 = arith.constant dense<0.000000e+00> : vector<8x8xf32>
    %108 = tpu.matmul %106, %107, %cst_53 {dimension_numbers = #tpu.dot_dimension_numbers<[1], [0], [0], [1], [0, 0, 1, 1], [], []>, precision = #tpu.contract_precision<fp32>} : vector<8x8xf32>, vector<8x8xf32>, vector<8x8xf32> -> vector<8x8xf32>
    %c16 = arith.constant 16 : index
    %c0_54 = arith.constant 0 : index
    %109 = vector.load %arg11[%c16, %c0_54] : memref<32x32xf32, #tpu.memory_space<vmem>>, vector<8x32xf32>
    %cst_55 = arith.constant dense<0.000000e+00> : vector<8x32xf32>
    %110 = tpu.matmul %108, %109, %cst_55 {dimension_numbers = #tpu.dot_dimension_numbers<[1], [0], [0], [1], [0, 0, 1, 1], [], []>, precision = #tpu.contract_precision<fp32>} : vector<8x8xf32>, vector<8x32xf32>, vector<8x32xf32> -> vector<8x32xf32>
    %111 = arith.addf %89, %110 : vector<8x32xf32>
    %112 = vector.extract_strided_slice %34 {offsets = [0, 24], sizes = [8, 8], strides = [1, 1]} : vector<8x32xf32> to vector<8x8xf32>
    %113 = vector.extract_strided_slice %38 {offsets = [0, 24], sizes = [8, 8], strides = [1, 1]} : vector<8x32xf32> to vector<8x8xf32>
    %cst_56 = arith.constant dense<0.000000e+00> : vector<8x8xf32>
    %114 = tpu.matmul %112, %113, %cst_56 {dimension_numbers = #tpu.dot_dimension_numbers<[1], [1], [0], [0], [0, 0, 1, 0], [], []>, precision = #tpu.contract_precision<fp32>} : vector<8x8xf32>, vector<8x8xf32>, vector<8x8xf32> -> vector<8x8xf32>
    %cst_57 = arith.constant 0.353553385 : f32
    %115 = vector.broadcast %cst_57 : f32 to vector<8x8xf32>
    %116 = arith.mulf %114, %115 : vector<8x8xf32>
    %cst_58 = arith.constant -1.000000e+09 : f32
    %117 = vector.broadcast %cst_58 : f32 to vector<8x8xf32>
    %118 = arith.select %44, %117, %116 : vector<8x8xi1>, vector<8x8xf32>
    %cst_59 = arith.constant dense<0xFF800000> : vector<8xf32>
    %119 = vector.multi_reduction <maximumf>, %118, %cst_59 [1] : vector<8x8xf32> to vector<8xf32>
    %120 = vector.shape_cast %119 : vector<8xf32> to vector<8x1xf32>
    %121 = vector.broadcast %120 : vector<8x1xf32> to vector<8x8xf32>
    %122 = arith.subf %118, %121 : vector<8x8xf32>
    %123 = math.exp %122 : vector<8x8xf32>
    %cst_60 = arith.constant dense<0.000000e+00> : vector<8xf32>
    %124 = vector.multi_reduction <add>, %123, %cst_60 [1] : vector<8x8xf32> to vector<8xf32>
    %125 = vector.shape_cast %124 : vector<8xf32> to vector<8x1xf32>
    %126 = tpu.reciprocal %125 : vector<8x1xf32> -> vector<8x1xf32>
    %127 = vector.broadcast %126 : vector<8x1xf32> to vector<8x8xf32>
    %128 = arith.mulf %123, %127 : vector<8x8xf32>
    %129 = vector.extract_strided_slice %42 {offsets = [0, 24], sizes = [8, 8], strides = [1, 1]} : vector<8x32xf32> to vector<8x8xf32>
    %cst_61 = arith.constant dense<0.000000e+00> : vector<8x8xf32>
    %130 = tpu.matmul %128, %129, %cst_61 {dimension_numbers = #tpu.dot_dimension_numbers<[1], [0], [0], [1], [0, 0, 1, 1], [], []>, precision = #tpu.contract_precision<fp32>} : vector<8x8xf32>, vector<8x8xf32>, vector<8x8xf32> -> vector<8x8xf32>
    %c24 = arith.constant 24 : index
    %c0_62 = arith.constant 0 : index
    %131 = vector.load %arg11[%c24, %c0_62] : memref<32x32xf32, #tpu.memory_space<vmem>>, vector<8x32xf32>
    %cst_63 = arith.constant dense<0.000000e+00> : vector<8x32xf32>
    %132 = tpu.matmul %130, %131, %cst_63 {dimension_numbers = #tpu.dot_dimension_numbers<[1], [0], [0], [1], [0, 0, 1, 1], [], []>, precision = #tpu.contract_precision<fp32>} : vector<8x8xf32>, vector<8x32xf32>, vector<8x32xf32> -> vector<8x32xf32>
    %133 = arith.addf %111, %132 : vector<8x32xf32>
    %134 = vector.broadcast %30 : vector<1x32xf32> to vector<8x32xf32>
    %135 = arith.addf %133, %134 : vector<8x32xf32>
    %136 = arith.addf %1, %135 : vector<8x32xf32>
    %c0_64 = arith.constant 0 : index
    %c0_65 = arith.constant 0 : index
    %c0_66 = arith.constant 0 : index
    %137 = vector.load %arg13[%c0_64, %c0_65, %c0_66] : memref<1x8x32xf32, #tpu.memory_space<vmem>>, vector<1x8x32xf32>
    %138 = vector.shape_cast %137 : vector<1x8x32xf32> to vector<8x32xf32>
    %139 = vector.shape_cast %136 : vector<8x32xf32> to vector<1x8x32xf32>
    tpu.vector_store %arg13[%c0_64, %c0_65, %c0_66], %139 {strides = array<i32>} : memref<1x8x32xf32, #tpu.memory_space<vmem>>, vector<1x8x32xf32>,
    return
  }
  func.func @transform_0(%arg0: i32) -> (i32, i32, i32) {
    %c0_i32 = arith.constant 0 : i32
    %c0_i32_0 = arith.constant 0 : i32
    %c0_i32_1 = arith.constant 0 : i32
    return %arg0, %c0_i32, %c0_i32_0 : i32, i32, i32
  }
  func.func @transform_1(%arg0: i32) -> (i32, i32, i32) {
    %c0_i32 = arith.constant 0 : i32
    %c0_i32_0 = arith.constant 0 : i32
    %c0_i32_1 = arith.constant 0 : i32
    return %arg0, %c0_i32, %c0_i32_0 : i32, i32, i32
  }
  func.func @transform_2(%arg0: i32) -> (i32, i32) {
    %c0_i32 = arith.constant 0 : i32
    %c0_i32_0 = arith.constant 0 : i32
    %c0_i32_1 = arith.constant 0 : i32
    return %c0_i32, %c0_i32_0 : i32, i32
  }
  func.func @transform_3(%arg0: i32) -> (i32, i32) {
    %c0_i32 = arith.constant 0 : i32
    %c0_i32_0 = arith.constant 0 : i32
    %c0_i32_1 = arith.constant 0 : i32
    return %c0_i32, %c0_i32_0 : i32, i32
  }
  func.func @transform_4(%arg0: i32) -> (i32, i32) {
    %c0_i32 = arith.constant 0 : i32
    %c0_i32_0 = arith.constant 0 : i32
    %c0_i32_1 = arith.constant 0 : i32
    return %c0_i32, %c0_i32_0 : i32, i32
  }
  func.func @transform_5(%arg0: i32) -> (i32, i32) {
    %c0_i32 = arith.constant 0 : i32
    %c0_i32_0 = arith.constant 0 : i32
    %c0_i32_1 = arith.constant 0 : i32
    return %c0_i32, %c0_i32_0 : i32, i32
  }
  func.func @transform_6(%arg0: i32) -> (i32, i32) {
    %c0_i32 = arith.constant 0 : i32
    %c0_i32_0 = arith.constant 0 : i32
    %c0_i32_1 = arith.constant 0 : i32
    return %c0_i32, %c0_i32_0 : i32, i32
  }
  func.func @transform_7(%arg0: i32) -> (i32, i32) {
    %c0_i32 = arith.constant 0 : i32
    %c0_i32_0 = arith.constant 0 : i32
    %c0_i32_1 = arith.constant 0 : i32
    return %c0_i32, %c0_i32_0 : i32, i32
  }
  func.func @transform_8(%arg0: i32) -> (i32, i32) {
    %c0_i32 = arith.constant 0 : i32
    %c0_i32_0 = arith.constant 0 : i32
    %c0_i32_1 = arith.constant 0 : i32
    return %c0_i32, %c0_i32_0 : i32, i32
  }
  func.func @transform_9(%arg0: i32) -> (i32, i32) {
    %c0_i32 = arith.constant 0 : i32
    %c0_i32_0 = arith.constant 0 : i32
    %c0_i32_1 = arith.constant 0 : i32
    return %c0_i32, %c0_i32_0 : i32, i32
  }
  func.func @transform_10(%arg0: i32) -> (i32, i32) {
    %c0_i32 = arith.constant 0 : i32
    %c0_i32_0 = arith.constant 0 : i32
    %c0_i32_1 = arith.constant 0 : i32
    return %c0_i32, %c0_i32_0 : i32, i32
  }
  func.func @transform_11(%arg0: i32) -> (i32, i32) {
    %c0_i32 = arith.constant 0 : i32
    %c0_i32_0 = arith.constant 0 : i32
    %c0_i32_1 = arith.constant 0 : i32
    return %c0_i32, %c0_i32_0 : i32, i32
  }
  func.func @transform_12(%arg0: i32) -> (i32, i32, i32) {
    %c0_i32 = arith.constant 0 : i32
    %c0_i32_0 = arith.constant 0 : i32
    %c0_i32_1 = arith.constant 0 : i32
    return %arg0, %c0_i32, %c0_i32_0 : i32, i32, i32
  }
}

</mosaic_0001>

<bundles_post_ra>
// kernel: tpu_custom_call.1
= control target key start
LH: loop header
LB: loop body
LE: loop exit
PB: predicated region body
PF: predicated region fallthrough
CT: control target
= control target key end

     0   :  { %s9942_s0 = inlined_call_operand.hbm [shape: f32[2,8,32], index: 0, kind: input, shape index: {}]   ;;  %s9943_s1 = inlined_call_operand.hbm [shape: s32[2,8,8], index: 1, kind: input, shape index: {}]   ;;  %s9944_s2 = inlined_call_operand.vmem [shape: f32[1,32], index: 2, kind: input, shape index: {}]   ;;  %s9945_s3 = inlined_call_operand.vmem [shape: f32[1,32], index: 3, kind: input, shape index: {}]   ;;  %s9946_s4 = inlined_call_operand.hbm [shape: f32[32,32], index: 4, kind: input, shape index: {}]   ;;  %s9947_s5 = inlined_call_operand.vmem [shape: f32[1,32], index: 5, kind: input, shape index: {}]   ;;  %s9948_s6 = inlined_call_operand.hbm [shape: f32[32,32], index: 6, kind: input, shape index: {}]   ;;  %s9949_s7 = inlined_call_operand.vmem [shape: f32[1,32], index: 7, kind: input, shape index: {}]   ;;  %s9950_s8 = inlined_call_operand.hbm [shape: f32[32,32], index: 8, kind: input, shape index: {}]   ;;  %s9951_s9 = inlined_call_operand.vmem [shape: f32[1,32], index: 9, kind: input, shape index: {}]   ;;  %s9952_s10 = inlined_call_operand.vmem [shape: f32[32,32], index: 10, kind: input, shape index: {}]   ;;  %s9953_s11 = inlined_call_operand.vmem [shape: f32[1,32], index: 11, kind: input, shape index: {}]   ;;  %s9954_s12 = inlined_call_operand.hbm [shape: f32[2,8,32], index: 12, kind: output, shape index: {}]  }
   0x1   :  { %9963 = sst [smem:[#allocation19_spill]] %s9946_s4 }
   0x2   :  { %9964 = sst [smem:[#allocation20_spill]] %s9948_s6 }
   0x3   :  { %9965 = sst [smem:[#allocation21_spill]] %s9950_s8 }
   0x4   :  { %9966 = sst [smem:[#allocation22_spill]] %s9951_s9 }
   0x5   :  { %9967 = sst [smem:[#allocation23_spill]] %s9952_s10 }
   0x6   :  { %9968 = sst [smem:[#allocation24_spill]] %s9953_s11 }
   0x7   :  { %9969 = sst [smem:[#allocation25_spill]] %s9954_s12 }
   0x8   :  { %17 = vsyncpa [#allocation3], 0 }
   0x9   :  { %19 = vsyncpa [#allocation3 + $0x1], 0 }
   0xa   :  { %20 = vsyncpa [#allocation6], 0 }
   0xb   :  { %22 = vsyncpa [#allocation6 + $0x1], 0 }
   0xc   :  { %23 = vsyncpa [#allocation9], 0 }
   0xd   :  { %24 = vsyncpa [#allocation4], 0 }
   0xe   :  { %26 = vsyncpa [#allocation4 + $0x1], 0  ;;  %s9115_s21 = smov 0   ;;  %s9117_s22 = smov 0  }
   0xf   :  { %s9119_s23 = smov 0   ;;  %s9121_s24 = smov 0  }
  0x10 LB: > { %9970 = sst [smem:[#allocation17_spill]] %s9022_s21  ;;  %s9136_s25 = sadd.s32 4294967295, %s9034_s24   ;;  %s9034_s24 = sphi %s9121_s24, %s10002_s24   ;;  %s9030_s23 = sphi %s9119_s23, %s10001_s23   ;;  %s9026_s22 = sphi %s9117_s22, %s10000_s22   ;;  %s9022_s21 = sphi %s9115_s21, %s9999_s21  }
  0x11   : > { %s7661_s26 = sadd.s32 4294967294, %s9034_s24   ;;  %p52_p0 = scmp.ne.s32.totalorder %s9026_s22, %s9022_s21 }
  0x12   : > { %p9957_p1 = scmp.eq.s32.totalorder %s9136_s25, 0  ;;  %p318_p3 = scmp.eq.s32.totalorder %s7661_s26, 1 }
  0x13   : > { %p7662_p5 = scmp.ge.s32.totalorder %s9034_s24, 1  ;;  %p325_p7 = scmp.lt.s32.totalorder %s9034_s24, 3 }
  0x14   : > { %p9145_p4 = por %p9957_p1, %p52_p0  ;;  %p9150_p6 = por %p318_p3, %p52_p0 }
  0x15   : > { %p9155_p8 = pnand %p7662_p5, %p325_p7  ;;  %s9036_s30 = smov [#allocation7]  }
  0x16   : > { %s9971_s27 = scalar_select %p9145_p4, 1, 0 }
  0x17   : > { %s9972_s28 = scalar_select %p9150_p6, 1, 0 }
  0x18   : > { %s9974_s29 = scalar_select %p9155_p8, 1, 0 }
  0x19   : > { %9973 = sst [smem:[#allocation18_spill]] %s9972_s28  ;;  %s343_s13 = sshll.u32 %s9036_s30, 4  ;;  %s9159_s13 = int_to_ptr.vmem [resolvable:$true] %s343_s13 }
  0x1a   : > { %p8719_p9 = pneg %p9155_p8  ;;  %s9037_s15 = smov [#allocation8]  }
  0x1b   : > { %s359_s16 = sshll.u32 %s9037_s15, 4  ;;  %s9038_s17 = smov [#allocation10]   ;;  %s9170_s16 = int_to_ptr.vmem [resolvable:$true] %s359_s16 }
  0x1c   : > { %p9166_p11 = pnand %p8719_p9, %p9957_p1  ;;  %s9172_s18 = sshll.u32 %s9038_s17, 4  ;;  %s376_s18 = int_to_ptr.vmem [resolvable:$true] %s9172_s18 }
  0x1d   : > { %s9976_s4 = sld [smem:[#allocation19_spill]] }
  0x1e   : > { %p9182_p13 = pneg %p9166_p11 }
  0x23   : > { %s8812_s26 = scalar_lea.hbm %s9976_s4, 512 }
  0x24   : > { %p8813_p12 = scmp.ne.s32.totalorder %s9976_s4, %s8812_s26  ;;  %p8819_p5 = scmp.lt.u32.totalorder %s8812_s26, %s9976_s4 }
  0x26   : > { %p8815_p0 = pnand %p9182_p13, %p8813_p12 }
  0x28   : > { %p8816_p3 = pneg %p8815_p0 }
  0x2a   : > { %p8821_p7 = pnand %p8819_p5, %p8816_p3 }
  0x2c   : > { %8824 = shalt.err (!%p8821_p7)
}
  0x2d   : > { %s8825_s28 = scalar_lea.vmem %s9159_s13, 512  ;;  %p8833_p2 = scmp.lt.s32.totalorder %s9159_s13, %s9159_s13 }
  0x2e   : > { %p8826_p9 = scmp.ne.s32.totalorder %s9159_s13, %s8825_s28  ;;  %p8834_p6 = scmp.lt.s32.totalorder %s8825_s28, %s8825_s28 }
  0x30   : > { %p8828_p10 = pnand %p8826_p9, %p9182_p13  ;;  %p8835_p12 = por %p8834_p6, %p8833_p2 }
  0x32   : > { %p8829_p1 = pneg %p8828_p10 }
  0x34   : > { %p8836_p0 = pnand %p8835_p12, %p8829_p1 }
  0x36   : > { %8839 = shalt.err (!%p8836_p0)
}
  0x37   : > { %s9039_s19 = smov 128   ;;  %s9040_s20 = smov 8  }
  0x38   : > { %8722 = dma.hbm_to_vmem [thread:$0]  (!%p9166_p11), %s9976_s4, 512, %s9159_s13, [#allocation6], %s9039_s19, %s9039_s19, %s9040_s20  }
  0x39   : > { %s9978_s6 = sld [smem:[#allocation20_spill]] }
  0x3f   : > { %s8840_s28 = scalar_lea.hbm %s9978_s6, 512 }
  0x40   : > { %p8841_p1 = scmp.ne.s32.totalorder %s9978_s6, %s8840_s28  ;;  %p8847_p10 = scmp.lt.u32.totalorder %s8840_s28, %s9978_s6 }
  0x42   : > { %p8843_p2 = pnand %p8841_p1, %p9182_p13 }
  0x44   : > { %p8844_p6 = pneg %p8843_p2 }
  0x46   : > { %p8849_p3 = pnand %p8847_p10, %p8844_p6 }
  0x48   : > { %8852 = shalt.err (!%p8849_p3)
}
  0x49   : > { %s8853_s13 = scalar_lea.vmem %s9170_s16, 512  ;;  %p8861_p12 = scmp.lt.s32.totalorder %s9170_s16, %s9170_s16 }
  0x4a   : > { %p8854_p5 = scmp.ne.s32.totalorder %s9170_s16, %s8853_s13  ;;  %p8862_p0 = scmp.lt.s32.totalorder %s8853_s13, %s8853_s13 }
  0x4c   : > { %p8856_p7 = pnand %p8854_p5, %p9182_p13  ;;  %p8863_p1 = por %p8862_p0, %p8861_p12 }
  0x4e   : > { %p8857_p9 = pneg %p8856_p7 }
  0x50   : > { %p8864_p2 = pnand %p8863_p1, %p8857_p9 }
  0x52   : > { %8867 = shalt.err (!%p8864_p2)
}
  0x53   : > { %8725 = dma.hbm_to_vmem [thread:$0]  (!%p9166_p11), %s9978_s6, 512, %s9170_s16, [#allocation9], %s9039_s19, %s9039_s19, %s9040_s20  }
  0x54   : > { %s9979_s8 = sld [smem:[#allocation21_spill]] }
  0x5a   : > { %s8868_s26 = scalar_lea.hbm %s9979_s8, 512 }
  0x5b   : > { %p8869_p6 = scmp.ne.s32.totalorder %s9979_s8, %s8868_s26  ;;  %p8875_p5 = scmp.lt.u32.totalorder %s8868_s26, %s9979_s8 }
  0x5d   : > { %p8871_p10 = pnand %p8869_p6, %p9182_p13 }
  0x5f   : > { %p8872_p3 = pneg %p8871_p10 }
  0x61   : > { %p8877_p7 = pnand %p8875_p5, %p8872_p3 }
  0x63   : > { %8880 = shalt.err (!%p8877_p7)
}
  0x64   : > { %s8881_s13 = scalar_lea.vmem %s376_s18, 512  ;;  %p8889_p1 = scmp.lt.s32.totalorder %s376_s18, %s376_s18 }
  0x65   : > { %p8882_p9 = scmp.ne.s32.totalorder %s376_s18, %s8881_s13  ;;  %p8890_p2 = scmp.lt.s32.totalorder %s8881_s13, %s8881_s13 }
  0x67   : > { %p8884_p12 = pnand %p8882_p9, %p9182_p13  ;;  %p8891_p4 = por %p8890_p2, %p8889_p1 }
  0x69   : > { %p8885_p0 = pneg %p8884_p12 }
  0x6b   : > { %p8892_p8 = pnand %p8891_p4, %p8885_p0 }
  0x6d   : > { %8895 = shalt.err (!%p8892_p8)
}
  0x6e   : > { %8728 = dma.hbm_to_vmem [thread:$0]  (!%p9166_p11), %s9979_s8, 512, %s376_s18, [#allocation9], %s9039_s19, %s9039_s19, %s9040_s20  }
  0x6f   : > { %s9255_s21 = sadd.s32 1, %s9034_s24   ;;  %s39_s10 = sadd.s32 1, %s9030_s23 }
  0x70   : > { %s36_s14 = ssub.s32 %s9034_s24, %s9255_s21  ;;  %p46_p8 = scmp.ne.s32.totalorder %s9030_s23, %s9026_s22 }
  0x71   : > { %p37_p4 = scmp.eq.s32.totalorder %s36_s14, 0  ;;  %p47_p13 = scmp.eq.s32.totalorder %s9034_s24, 0 }
  0x72   : > { %p8743_p6 = scmp.lt.s32.totalorder %s9034_s24, 2  ;;  %p9980_p3 = scmp.eq.s32.totalorder %s9136_s25, 1 }
  0x73   : > { %s9265_s11 = scalar_select %p37_p4, %s9030_s23, %s39_s10  }
  0x74   : > { %p48_p10 = por %p47_p13, %p46_p8  ;;  %p9269_p5 = por %p9980_p3, %p46_p8 }
  0x75   : > { %s398_s26 = sand.u32 1, %s9030_s23   ;;  %s7668_s30 = sshll.u32 %s9034_s24, 7 }
  0x76   : > { %s9981_s12 = scalar_select %p9269_p5, 1, 0 }
  0x77   : > { %s9275_s18 = sshll.u32 %s398_s26, 3  ;;  %s9280_s15 = scalar_lea.hbm %s9942_s0, %s7668_s30 }
  0x78   : > { %s402_s17 = scalar_lea.vmem [#allocation2], %s9275_s18  ;;  %p9283_p11 = pnand %p8743_p6, %p48_p10 }
  0x79   : > { %s409_s28 = sshll.u32 %s402_s17, 4  ;;  %s9292_s14 = scalar_lea.hbm %s9943_s1, %s7668_s30  ;;  %s9287_s28 = int_to_ptr.vmem [resolvable:$true] %s409_s28 }
  0x7a   : > { %s399_s10 = scalar_lea.sflag [#allocation3], %s398_s26  ;;  %s8896_s19 = scalar_lea.hbm %s9280_s15, 128 }
  0x7b   : > { %p8897_p7 = scmp.ne.s32.totalorder %s9280_s15, %s8896_s19  ;;  %p8898_p9 = pneg %p9283_p11 }
  0x7c   : > { %s8901_s4 = scalar_lea.hbm %s9942_s0, 256  ;;  %p8902_p1 = scmp.lt.u32.totalorder %s9280_s15, %s9942_s0 }
  0x7d   : > { %p8899_p12 = pnand %p8898_p9, %p8897_p7  ;;  %p8903_p2 = scmp.lt.u32.totalorder %s8901_s4, %s8896_s19 }
  0x7e   : > { %p8905_p8 = scmp.lt.u32.totalorder %s8896_s19, %s9280_s15 }
  0x7f   : > { %p8900_p0 = pneg %p8899_p12  ;;  %p8904_p4 = por %p8903_p2, %p8902_p1 }
  0x81   : > { %p8906_p13 = por %p8905_p8, %p8904_p4 }
  0x83   : > { %p8907_p6 = pnand %p8906_p13, %p8900_p0 }
  0x85   : > { %8910 = shalt.err (!%p8907_p6)
}
  0x86   : > { %s8911_s26 = scalar_lea.vmem %s9287_s28, 128  ;;  %s9041_s30 = smov [#allocation2]  }
  0x87   : > { %p8912_p10 = scmp.ne.s32.totalorder %s9287_s28, %s8911_s26  ;;  %s8916_s16 = sshll.u32 %s9041_s30, 4  ;;  %s8917_s16 = int_to_ptr.vmem [resolvable:$false] %s8916_s16 }
  0x88   : > { %s8918_s6 = scalar_lea.vmem %s8917_s16, 256  ;;  %p8919_p12 = scmp.lt.s32.totalorder %s9287_s28, %s8917_s16 }
  0x89   : > { %p8914_p3 = pnand %p8912_p10, %p8898_p9  ;;  %p8920_p1 = scmp.lt.s32.totalorder %s8918_s6, %s8911_s26 }
  0x8b   : > { %p8915_p7 = pneg %p8914_p3  ;;  %p8921_p2 = por %p8920_p1, %p8919_p12 }
  0x8d   : > { %p8922_p4 = pnand %p8921_p2, %p8915_p7 }
  0x8f   : > { %8925 = shalt.err (!%p8922_p4)
}
  0x90   : > { %8732 = dma.hbm_to_vmem [thread:$0]  (!%p9283_p11), %s9280_s15, 128, %s9287_s28, %s399_s10  }
  0x91   : > { %s416_s4 = sand.u32 1, %s9034_s24   ;;  %s420_s8 = scalar_lea.vmem [#allocation5], %s9275_s18 }
  0x92   : > { %s427_s9 = sshll.u32 %s420_s8, 4  ;;  %s417_s19 = scalar_lea.sflag [#allocation6], %s416_s4  ;;  %s428_s9 = int_to_ptr.vmem [resolvable:$true] %s427_s9 }
  0x93   : > { %s8926_s20 = scalar_lea.hbm %s9292_s14, 128  ;;  %s8931_s30 = scalar_lea.hbm %s9943_s1, 256 }
  0x94   : > { %p8927_p0 = scmp.ne.s32.totalorder %s9292_s14, %s8926_s20  ;;  %p8932_p6 = scmp.lt.u32.totalorder %s9292_s14, %s9943_s1 }
  0x95   : > { %p8933_p10 = scmp.lt.u32.totalorder %s8931_s30, %s8926_s20  ;;  %p8935_p7 = scmp.lt.u32.totalorder %s8926_s20, %s9292_s14 }
  0x96   : > { %p8929_p8 = pnand %p8927_p0, %p8898_p9 }
  0x97   : > { %p8934_p3 = por %p8933_p10, %p8932_p6 }
  0x98   : > { %p8930_p13 = pneg %p8929_p8 }
  0x99   : > { %p8936_p12 = por %p8935_p7, %p8934_p3 }
  0x9b   : > { %p8937_p1 = pnand %p8936_p12, %p8930_p13 }
  0x9d   : > { %8940 = shalt.err (!%p8937_p1)
}
  0x9e   : > { %s8941_s18 = scalar_lea.vmem %s428_s9, 128  ;;  %s9042_s15 = smov [#allocation5]  }
  0x9f   : > { %p8942_p2 = scmp.ne.s32.totalorder %s428_s9, %s8941_s18  ;;  %s8946_s28 = sshll.u32 %s9042_s15, 4  ;;  %s8947_s28 = int_to_ptr.vmem [resolvable:$false] %s8946_s28 }
  0xa0   : > { %s8948_s10 = scalar_lea.vmem %s8947_s28, 256  ;;  %p8949_p8 = scmp.lt.s32.totalorder %s428_s9, %s8947_s28 }
  0xa1   : > { %p8944_p4 = pnand %p8942_p2, %p8898_p9  ;;  %p8950_p5 = scmp.lt.s32.totalorder %s8948_s10, %s8941_s18 }
  0xa3   : > { %p8945_p0 = pneg %p8944_p4  ;;  %p8951_p6 = por %p8950_p5, %p8949_p8 }
  0xa5   : > { %p8952_p10 = pnand %p8951_p6, %p8945_p0 }
  0xa7   : > { %8955 = shalt.err (!%p8952_p10)
}
  0xa8   : > { %8735 = dma.hbm_to_vmem [thread:$0]  (!%p9283_p11), %s9292_s14, 128, %s428_s9, %s417_s19  }
  0xa9   : > { %p9983_p13 = scmp.ne.s32.totalorder %s9974_s29, 0 }
  0xaa   : > { %s9343_s4 = sand.u32 (!%p9983_p13), 1, %s9026_s22   ;;  %p9984_p5 = scmp.ne.s32.totalorder (!%p9983_p13), %s9971_s27, 0 }
  0xab   : > { %436 = sbr.rel (%p9983_p13) target bundleno = 3724 (0xe8c), region = 68  ;;  %s9346_s8 = sshll.u32 (!%p9983_p13), %s9343_s4, 3 }
  0xac   : > { %s439_s20 = scalar_lea.sflag (!%p9983_p13), [#allocation3], %s9343_s4  ;;  %s442_s17 = scalar_lea.vmem (!%p9983_p13), [#allocation2], %s9346_s8 }
  0xb2   : > { %9001 = dma.done.wait (%p9984_p5), %s439_s20, 128  }
  0xb3   : > { %9003 = vsyncadd (%p9984_p5), %s439_s20, 4294967168  ;;  %s447_s29 = sand.u32 1, %s9136_s25   ;;  %s451_s14 = scalar_lea.vmem [#allocation5], %s9346_s8 }
  0xb4   : > { %s448_s13 = scalar_lea.sflag [#allocation6], %s447_s29 }
  0xb5   : > { %9005 = dma.done.wait (%p9984_p5), %s448_s13, 128  }
  0xb6   : > { %9007 = vsyncadd (%p9984_p5), %s448_s13, 4294967168  ;;  %p9985_p11 = scmp.eq.s32.totalorder %s9136_s25, 0 }
  0xb8   : > { %9009 = dma.done.wait (%p9985_p11), [#allocation6], 512   ;;  %p9986_p9 = pmov %p9985_p11 }
  0xba   : > { %9011 = vsyncadd (%p9986_p9), [#allocation6], 4294966784  ;;  %p9987_p3 = pmov %p9986_p9 }
  0xbc   : > { %9013 = dma.done.wait (%p9987_p3), [#allocation9], 1024   ;;  %p9988_p7 = pmov %p9987_p3 }
  0xbd   : > { %vm512_vm0 = vcmask 261120   ;;  %v509_v0 = vld [vmem:[%s442_s17] sm:$0xff]  ;;  %v9043_v10 = vmov 0.0|0.0   ;;  %v555_v15 = vld [vmem:[#allocation7 + $0x10] sm:$0xff]  ;;  %v556_v16 = vld [vmem:[#allocation7 + $0x18] sm:$0xff]  ;;  %vm9044_vm1 = vmmov 0  }
  0xbe   : > { %9015 = vsyncadd (%p9988_p7), [#allocation9], 4294966272  ;;  %v513_v1 = vsel %vm512_vm0, %v509_v0, 0.0  ;;  %v553_v7 = vld [vmem:[#allocation7] sm:$0xff]  ;;  %v554_v8 = vld [vmem:[#allocation7 + $0x8] sm:$0xff]  ;;  %8480 = vmatprep.subr.bf16.mxu0 %v9043_v10  ;;  %8516 = vmatprep.subr.bf16.mxu1 %v9043_v10  ;;  %v573_v18 = vand.u32 4294901760, %v555_v15 }
  0xbf   : > { %514 = vadd.xlane.f32.xlu0 %v513_v1  ;;  %v1051_v9 = vld [vmem:[#allocation8] sm:$0xff]  ;;  %v567_v11 = vand.u32 4294901760, %v553_v7  ;;  %v570_v12 = vand.u32 4294901760, %v554_v8  ;;  %v1052_v13 = vld [vmem:[#allocation8 + $0x8] sm:$0xff]  ;;  %v576_v19 = vand.u32 4294901760, %v556_v16  ;;  %v1053_v20 = vld [vmem:[#allocation8 + $0x10] sm:$0xff] }
  0xc0   : > { %v1062_v14 = vand.u32 4294901760, %v1051_v9  ;;  %v1065_v17 = vand.u32 4294901760, %v1052_v13  ;;  %v1054_v21 = vld [vmem:[#allocation8 + $0x18] sm:$0xff]  ;;  %v9045_v22 = vmov 0.0   ;;  %v9394_v29 = vsub.f32 %v555_v15, %v573_v18  ;;  %s9046_s15 = smov 120   ;;  %s9989_s20 = sld [smem:[#allocation22_spill]] }
  0xc1   : > { %7930 = vmatprep.mubr.msk.f32.mxu0 %vm9044_vm1, %v9045_v22  ;;  %7996 = vmatprep.mubr.msk.f32.mxu1 %vm9044_vm1, %v9045_v22  ;;  %v9382_v23 = vpack.c.bf16 %v570_v12, %v567_v11  ;;  %v9384_v24 = vsub.f32 %v553_v7, %v567_v11  ;;  %v9386_v25 = vsub.f32 %v554_v8, %v570_v12  ;;  %v1068_v32 = vand.u32 4294901760, %v1053_v20  ;;  %s9047_s29 = smov 112   ;;  %s9990_s27 = sld [smem:[#allocation23_spill]] }
  0xc2   : > { %v9388_v26 = vsub.f32 %v1051_v9, %v1062_v14  ;;  %v9390_v27 = vpack.c.bf16 %v1065_v17, %v1062_v14  ;;  %v9392_v28 = vsub.f32 %v1052_v13, %v1065_v17  ;;  %v9397_v30 = vpack.c.bf16 %v576_v19, %v573_v18  ;;  %s9048_s26 = smov 104   ;;  %s9991_s10 = sld [smem:[#allocation24_spill]] }
  0xc3   : > { %8482 = vmatpush3.bf16.msra.mxu0 %v9382_v23  ;;  %v9399_v31 = vsub.f32 %v556_v16, %v576_v19  ;;  %v1071_v33 = vand.u32 4294901760, %v1054_v21  ;;  %v9406_v35 = vsub.f32 %v1053_v20, %v1068_v32  ;;  %v648_v37 = vand.u32 4294901760, %v9384_v24  ;;  %v7678_v20 = vld [vmem:[%s9944_s2] ss:$0 sm:$0xff]  ;;  %s9992_s19 = sld [smem:[#allocation25_spill]]  ;;  %s7527_s30 = scalar_lea.sflag [#allocation4], %s9343_s4 }
  0xc4   : > { %8518 = vmatpush3.bf16.msra.mxu1 %v9390_v27  ;;  %8483 = vmatprep.subr.bf16.mxu0 %v9043_v10  ;;  %v655_v38 = vand.u32 4294901760, %v9386_v25  ;;  %v1143_v41 = vand.u32 4294901760, %v9388_v26  ;;  %v1150_v42 = vand.u32 4294901760, %v9392_v28  ;;  %v662_v47 = vand.u32 4294901760, %v9394_v29  ;;  %p9993_p1 = scmp.ne.s32.totalorder %s9981_s12, 0 }
  0xc5   : > { %8519 = vmatprep.subr.bf16.mxu1 %v9043_v10  ;;  %v9404_v34 = vpack.c.bf16 %v1071_v33, %v1068_v32  ;;  %v9408_v36 = vsub.f32 %v1054_v21, %v1071_v33  ;;  %v649_v39 = vsub.f32 %v9384_v24, %v648_v37  ;;  %v669_v48 = vand.u32 4294901760, %v9399_v31 }
  0xc6   : > { %v656_v40 = vsub.f32 %v9386_v25, %v655_v38  ;;  %v1144_v45 = vsub.f32 %v9388_v26, %v1143_v41  ;;  %v1151_v46 = vsub.f32 %v9392_v28, %v1150_v42  ;;  %v1157_v52 = vand.u32 4294901760, %v9406_v35 }
  0xc7   : > { %8485 = vmatpush3.bf16.msra.mxu0 %v9397_v30  ;;  %v650_v43 = vand.u32 4294901760, %v649_v39  ;;  %v663_v53 = vsub.f32 %v9394_v29, %v662_v47  ;;  %v670_v54 = vsub.f32 %v9399_v31, %v669_v48  ;;  %v1164_v55 = vand.u32 4294901760, %v9408_v36  ;;  %v1548_v39 = vld [vmem:[#allocation10 + $0x10] sm:$0xff] }
  0xc8   : > { %8521 = vmatpush3.bf16.msra.mxu1 %v9404_v34  ;;  %8486 = vmatprep.subr.bf16.mxu0 %v9043_v10  ;;  %v657_v44 = vand.u32 4294901760, %v656_v40  ;;  %v1145_v50 = vand.u32 4294901760, %v1144_v45  ;;  %v1152_v51 = vand.u32 4294901760, %v1151_v46  ;;  %v1158_v57 = vsub.f32 %v9406_v35, %v1157_v52  ;;  %v1549_v40 = vld [vmem:[#allocation10 + $0x18] sm:$0xff] }
  0xc9   : > { %8522 = vmatprep.subr.bf16.mxu1 %v9043_v10  ;;  %v664_v58 = vand.u32 4294901760, %v663_v53  ;;  %v671_v59 = vand.u32 4294901760, %v670_v54  ;;  %v1165_v60 = vsub.f32 %v9408_v36, %v1164_v55  ;;  %v8493_v1 = vpack.c.bf16 %v9386_v25, %v9384_v24  ;;  %v7679_v24 = vld [vmem:[%s9945_s3] ss:$0 sm:$0xff] }
  0xca   : > { %v8487_v49 = vpack.c.bf16 %v657_v44, %v650_v43  ;;  %v8523_v56 = vpack.c.bf16 %v1152_v51, %v1145_v50  ;;  %v1159_v61 = vand.u32 4294901760, %v1158_v57  ;;  %v9440_v7 = vpack.c.bf16 %v1150_v42, %v1143_v41 }
  0xcb   : > { %v8490_v62 = vpack.c.bf16 %v671_v59, %v664_v58  ;;  %v1166_v63 = vand.u32 4294901760, %v1165_v60  ;;  %v9442_v8 = vpack.c.bf16 %v669_v48, %v662_v47  ;;  %v9444_v9 = vpack.c.bf16 %v1164_v55, %v1157_v52 }
  0xcc   : > { %v1563_v43 = vand.u32 4294901760, %v1548_v39  ;;  %v1566_v44 = vand.u32 4294901760, %v1549_v40  ;;  %vm2042_vm4 = vcmask 64512  }
  0xce   : > { %v1651_v45 = vsub.f32 %v1548_v39, %v1563_v43  ;;  %v1658_v46 = vsub.f32 %v1549_v40, %v1566_v44  ;;  %v8556_v52 = vpack.c.bf16 %v1566_v44, %v1563_v43  ;;  %v9642_v43 = vld [vmem:[%s451_s14] sm:$0xff] }
  0xcf   : > { %vm2041_vm5 = vcmp.eq.s32.totalorder %v9642_v43, 0 }
  0xd0   : > { %v1652_v50 = vand.u32 4294901760, %v1651_v45  ;;  %v1659_v51 = vand.u32 4294901760, %v1658_v46  ;;  %v8568_v60 = vpack.c.bf16 %v1658_v46, %v1651_v45 }
  0xd2   : > { %v1653_v53 = vsub.f32 %v1651_v45, %v1652_v50  ;;  %v1660_v54 = vsub.f32 %v1658_v46, %v1659_v51 }
  0xd4   : > { %v1661_v57 = vand.u32 4294901760, %v1660_v54 }
 0x14c   : > { %v515_v2 = vpop.xlane.xlu0 %514 }
 0x14d   : > { %v517_v3 = vmul.f32 0.03125, %v515_v2  ;;  %v8529_v2 = vpack.c.bf16 %v9392_v28, %v9388_v26 }
 0x14f   : > { %v9371_v4 = vsub.f32 %v509_v0, %v517_v3  ;;  %v8526_v0 = vpack.c.bf16 %v1166_v63, %v1159_v61  ;;  %v8496_v3 = vpack.c.bf16 %v9399_v31, %v9394_v29  ;;  %v7680_v63 = vld [vmem:[%s9947_s5] ss:$0 sm:$0xff] }
 0x151   : > { %v519_v5 = vmul.f32 %v9371_v4, %v9371_v4 }
 0x153   : > { %v520_v6 = vsel %vm512_vm0, %v519_v5, 0.0  ;;  %v8532_v5 = vpack.c.bf16 %v9408_v36, %v9406_v35  ;;  %v1546_v35 = vld [vmem:[#allocation10] sm:$0xff]  ;;  %v1547_v36 = vld [vmem:[#allocation10 + $0x8] sm:$0xff] }
 0x154   : > { %521 = vadd.xlane.f32.xlu0 %v520_v6  ;;  %v9438_v6 = vpack.c.bf16 %v655_v38, %v648_v37  ;;  %v1557_v37 = vand.u32 4294901760, %v1546_v35  ;;  %v1560_v38 = vand.u32 4294901760, %v1547_v36 }
 0x156   : > { %v9512_v41 = vsub.f32 %v1546_v35, %v1557_v37  ;;  %v9514_v42 = vsub.f32 %v1547_v36, %v1560_v38 }
 0x158   : > { %v1638_v47 = vand.u32 4294901760, %v9512_v41  ;;  %v1645_v48 = vand.u32 4294901760, %v9514_v42  ;;  %v8565_v59 = vpack.c.bf16 %v9514_v42, %v9512_v41 }
 0x15a   : > { %v8577_v61 = vpack.c.bf16 %v1645_v48, %v1638_v47 }
 0x1e1   : > { %v522_v11 = vpop.xlane.xlu0 %521 }
 0x1e2   : > { %v523_v12 = vmul.f32 0.032258064, %v522_v11 }
 0x1e4   : > { %8791 = vrsqrt.f32 %v523_v12  ;;  %vm526_vm2 = vcmp.eq.f32.partialorder %v523_v12, inf  ;;  %v529_v15 = vand.u32 2147483648, %v523_v12  ;;  %vm528_vm3 = vcmp.eq.f32.partialorder %v523_v12, 0.0 }
 0x1ee   : > { %v8792_v13 = vpop.eup %8791 }
 0x1ef   : > { %v525_v14 = vmul.f32 %v8792_v13, %v523_v12 }
 0x1f1   : > { %v527_v16 = vsel %vm526_vm2, %v523_v12, %v525_v14 }
 0x1f2   : > { %v530_v17 = vsel %vm528_vm3, %v529_v15, %v527_v16 }
 0x1f3   : > { %v531_v18 = vadd.f32 1e-06, %v530_v17 }
 0x1f5   : > { %8793 = vrcp.f32 %v531_v18 }
 0x1ff   : > { %v8794_v19 = vpop.eup %8793 }
 0x200   : > { %v533_v21 = vmul.f32 %v8794_v19, %v9371_v4 }
 0x202   : > { %v540_v25 = vmul.f32 %v7678_v20, %v533_v21  ;;  %v7682_v20 = vld [vmem:[%s9989_s20] ss:$0 sm:$0xff]  ;;  %s7685_s20 = sshll.u32 %s9136_s25, 7 }
 0x204   : > { %v547_v26 = vadd.f32 %v7679_v24, %v540_v25 }
 0x206   : > { %v564_v28 = vsel %vm512_vm0, %v547_v26, 0 }
 0x207   : > { %v9454_v29 = vand.u32 4294901760, %v564_v28 }
 0x209   : > { %v9457_v31 = vsub.f32 %v564_v28, %v9454_v29 }
 0x20b   : > { %v9460_v32 = vand.u32 4294901760, %v9457_v31 }
 0x20d   : > { %v638_v33 = vsub.f32 %v9457_v31, %v9460_v32 }
 0x20f   : > { %v9464_v4 = vand.u32 4294901760, %v638_v33 }
 0x211   : > { %7931 = vmatmul.mubr.f32.vlgmr.msra.gmra.mrb[0].mxu0 %v9464_v4  ;;  %7997 = vmatmul.mubr.f32.vlgmr.msra.gmra.mrb[0].mxu1 %v9464_v4 }
 0x212   : > { %8488 = vmatpush3.bf16.msra.mxu0 %v8487_v49  ;;  %8524 = vmatpush3.bf16.msra.mxu1 %v8523_v56  ;;  %v8553_v49 = vpack.c.bf16 %v1560_v38, %v1557_v37  ;;  %v1654_v56 = vand.u32 4294901760, %v1653_v53 }
 0x213   : > { %8489 = vmatprep.subr.bf16.mxu0 %v9043_v10  ;;  %8525 = vmatprep.subr.bf16.mxu1 %v9043_v10 }
 0x214   : > { %7941 = vmatprep.mubr.msk.f32.mxu0 %vm9044_vm1, %v9045_v22  ;;  %8007 = vmatprep.mubr.msk.f32.mxu1 %vm9044_vm1, %v9045_v22  ;;  %v8562_v58 = vpack.c.bf16 %v1661_v57, %v1654_v56 }
 0x216   : > { %8491 = vmatpush3.bf16.msra.mxu0 %v8490_v62  ;;  %8527 = vmatpush3.bf16.msra.mxu1 %v8526_v0  ;;  %v8580_v62 = vpack.c.bf16 %v1659_v51, %v1652_v50  ;;  %v7681_v0 = vld [vmem:[%s9949_s7] ss:$0 sm:$0xff] }
 0x217   : > { %8492 = vmatprep.subr.bf16.mxu0 %v9043_v10  ;;  %8528 = vmatprep.subr.bf16.mxu1 %v9043_v10 }
 0x219   : > { %7942 = vmatmul.mubr.f32.vlgmr.msra.gmra.mrb[0].mxu0 %v9454_v29  ;;  %8008 = vmatmul.mubr.f32.vlgmr.msra.gmra.mrb[0].mxu1 %v9454_v29 }
 0x21a   : > { %8494 = vmatpush3.bf16.msra.mxu0 %v8493_v1  ;;  %8530 = vmatpush3.bf16.msra.mxu1 %v8529_v2 }
 0x21b   : > { %8495 = vmatprep.subr.bf16.mxu0 %v9043_v10  ;;  %8531 = vmatprep.subr.bf16.mxu1 %v9043_v10 }
 0x21c   : > { %7952 = vmatprep.mubr.msk.f32.mxu0 %vm9044_vm1, %v9045_v22  ;;  %8018 = vmatprep.mubr.msk.f32.mxu1 %vm9044_vm1, %v9045_v22 }
 0x21e   : > { %8497 = vmatpush3.bf16.msra.mxu0 %v8496_v3  ;;  %8533 = vmatpush3.bf16.msra.mxu1 %v8532_v5 }
 0x21f   : > { %8498 = vmatprep.subr.bf16.mxu0 %v9043_v10  ;;  %8534 = vmatprep.subr.bf16.mxu1 %v9043_v10 }
 0x221   : > { %7953 = vmatmul.mubr.f32.vlgmr.msra.gmra.mrb[0].mxu0 %v9457_v31  ;;  %8019 = vmatmul.mubr.f32.vlgmr.msra.gmra.mrb[0].mxu1 %v9457_v31 }
 0x222   : > { %8500 = vmatpush3.bf16.msra.mxu0 %v9382_v23  ;;  %8536 = vmatpush3.bf16.msra.mxu1 %v9390_v27 }
 0x223   : > { %8501 = vmatprep.subr.bf16.mxu0 %v9043_v10  ;;  %8537 = vmatprep.subr.bf16.mxu1 %v9043_v10 }
 0x224   : > { %7963 = vmatprep.mubr.msk.f32.mxu0 %vm9044_vm1, %v9045_v22  ;;  %8029 = vmatprep.mubr.msk.f32.mxu1 %vm9044_vm1, %v9045_v22 }
 0x226   : > { %8503 = vmatpush3.bf16.msra.mxu0 %v9397_v30  ;;  %8539 = vmatpush3.bf16.msra.mxu1 %v9404_v34 }
 0x227   : > { %8504 = vmatprep.subr.bf16.mxu0 %v9043_v10  ;;  %8540 = vmatprep.subr.bf16.mxu1 %v9043_v10 }
 0x229   : > { %7964 = vmatmul.mubr.f32.vlgmr.msra.gmra.mrb[0].mxu0 %v9460_v32  ;;  %8030 = vmatmul.mubr.f32.vlgmr.msra.gmra.mrb[0].mxu1 %v9460_v32 }
 0x22a   : > { %8506 = vmatpush3.bf16.msra.mxu0 %v9438_v6  ;;  %8542 = vmatpush3.bf16.msra.mxu1 %v9440_v7 }
 0x22b   : > { %8507 = vmatprep.subr.bf16.mxu0 %v9043_v10  ;;  %8543 = vmatprep.subr.bf16.mxu1 %v9043_v10 }
 0x22c   : > { %7974 = vmatprep.mubr.msk.f32.mxu0 %vm9044_vm1, %v9045_v22  ;;  %8040 = vmatprep.mubr.msk.f32.mxu1 %vm9044_vm1, %v9045_v22 }
 0x22e   : > { %8509 = vmatpush3.bf16.msra.mxu0 %v9442_v8  ;;  %8545 = vmatpush3.bf16.msra.mxu1 %v9444_v9 }
 0x22f   : > { %8510 = vmatprep.subr.bf16.mxu0 %v9043_v10  ;;  %8546 = vmatprep.subr.bf16.mxu1 %v9043_v10 }
 0x231   : > { %7975 = vmatmul.mubr.f32.vlgmr.msra.gmra.mrb[0].mxu0 %v9454_v29  ;;  %8041 = vmatmul.mubr.f32.vlgmr.msra.gmra.mrb[0].mxu1 %v9454_v29 }
 0x232   : > { %8512 = vmatpush3.bf16.msra.mxu0 %v9382_v23  ;;  %8548 = vmatpush3.bf16.msra.mxu1 %v9390_v27  ;;  %v1639_v23 = vsub.f32 %v9512_v41, %v1638_v47  ;;  %v1646_v27 = vsub.f32 %v9514_v42, %v1645_v48 }
 0x233   : > { %8513 = vmatprep.subr.bf16.mxu0 %v9043_v10  ;;  %8549 = vmatprep.subr.bf16.mxu1 %v9043_v10 }
 0x234   : > { %7985 = vmatprep.mubr.msk.f32.mxu0 %vm9044_vm1, %v9045_v22  ;;  %8051 = vmatprep.mubr.msk.f32.mxu1 %vm9044_vm1, %v9045_v22 }
 0x236   : > { %8515 = vmatpush3.bf16.msra.mxu0 %v9397_v30  ;;  %8551 = vmatpush3.bf16.msra.mxu1 %v9404_v34  ;;  %v1640_v30 = vand.u32 4294901760, %v1639_v23  ;;  %v1647_v34 = vand.u32 4294901760, %v1646_v27 }
 0x237   : > { %8552 = vmatprep.subr.bf16.mxu0 %v9043_v10  ;;  %8120 = vmatprep.subr.mxu1 %v9045_v22 }
 0x238   : > { %v8559_v55 = vpack.c.bf16 %v1647_v34, %v1640_v30 }
 0x239   : > { %7986 = vmatmul.mubr.f32.vlgmr.msra.gmra.mrb[0].mxu0 %v9454_v29  ;;  %8052 = vmatmul.mubr.f32.vlgmr.msra.gmra.mrb[0].mxu1 %v9454_v29 }
 0x23a   : > { %8554 = vmatpush3.bf16.msra.mxu0 %v8553_v49  ;;  %8062 = vmatprep.mubr.msk.f32.mxu0 %vm9044_vm1, %v9045_v22 }
 0x23b   : > { %8555 = vmatprep.subr.bf16.mxu0 %v9043_v10  ;;  %8122 = vmatprep.mubr.msk.f32.mxu1 %vm9044_vm1, %v9045_v22 }
 0x23e   : > { %8557 = vmatpush3.bf16.msra.mxu0 %v8556_v52 }
 0x23f   : > { %8558 = vmatprep.subr.bf16.mxu0 %v9043_v10 }
 0x241   : > { %8063 = vmatmul.mubr.f32.vlgmr.msra.gmra.mrb[2].mxu0 %v9464_v4 }
 0x242   : > { %8560 = vmatpush3.bf16.msra.mxu0 %v8559_v55  ;;  %8073 = vmatprep.mubr.msk.f32.mxu0 %vm9044_vm1, %v9045_v22 }
 0x243   : > { %8561 = vmatprep.subr.bf16.mxu0 %v9043_v10 }
 0x246   : > { %8563 = vmatpush3.bf16.msra.mxu0 %v8562_v58 }
 0x247   : > { %8564 = vmatprep.subr.bf16.mxu0 %v9043_v10 }
 0x249   : > { %8074 = vmatmul.mubr.f32.vlgmr.msra.gmra.mrb[2].mxu0 %v9454_v29 }
 0x24a   : > { %8566 = vmatpush3.bf16.msra.mxu0 %v8565_v59  ;;  %8084 = vmatprep.mubr.msk.f32.mxu0 %vm9044_vm1, %v9045_v22 }
 0x24b   : > { %8567 = vmatprep.subr.bf16.mxu0 %v9043_v10 }
 0x24e   : > { %8569 = vmatpush3.bf16.msra.mxu0 %v8568_v60 }
 0x24f   : > { %8570 = vmatprep.subr.bf16.mxu0 %v9043_v10 }
 0x251   : > { %8085 = vmatmul.mubr.f32.vlgmr.msra.gmra.mrb[2].mxu0 %v9457_v31 }
 0x252   : > { %8572 = vmatpush3.bf16.msra.mxu0 %v8553_v49  ;;  %8095 = vmatprep.mubr.msk.f32.mxu0 %vm9044_vm1, %v9045_v22 }
 0x253   : > { %8573 = vmatprep.subr.bf16.mxu0 %v9043_v10 }
 0x256   : > { %8575 = vmatpush3.bf16.msra.mxu0 %v8556_v52 }
 0x257   : > { %8576 = vmatprep.subr.bf16.mxu0 %v9043_v10 }
 0x259   : > { %8096 = vmatmul.mubr.f32.vlgmr.msra.gmra.mrb[2].mxu0 %v9460_v32 }
 0x25a   : > { %8578 = vmatpush3.bf16.msra.mxu0 %v8577_v61  ;;  %8106 = vmatprep.mubr.msk.f32.mxu0 %vm9044_vm1, %v9045_v22 }
 0x25b   : > { %8579 = vmatprep.subr.bf16.mxu0 %v9043_v10 }
 0x25e   : > { %8581 = vmatpush3.bf16.msra.mxu0 %v8580_v62 }
 0x25f   : > { %8582 = vmatprep.subr.bf16.mxu0 %v9043_v10 }
 0x261   : > { %8107 = vmatmul.mubr.f32.vlgmr.msra.gmra.mrb[2].mxu0 %v9454_v29 }
 0x262   : > { %8584 = vmatpush3.bf16.msra.mxu0 %v8553_v49  ;;  %8117 = vmatprep.mubr.msk.f32.mxu0 %vm9044_vm1, %v9045_v22 }
 0x263   : > { %8585 = vmatprep.subr.bf16.mxu0 %v9043_v10 }
 0x266   : > { %8587 = vmatpush3.bf16.msra.mxu0 %v8556_v52 }
 0x267   : > { %8180 = vmatprep.subr.mxu0 %v9045_v22 }
 0x269   : > { %8118 = vmatmul.mubr.f32.vlgmr.msra.gmra.mrb[2].mxu0 %v9454_v29 }
 0x26a   : > { %8182 = vmatprep.mubr.msk.f32.mxu0 %vm9044_vm1, %v9045_v22 }
 0x30c   : > { %v1047_v1 = vpop.f32.mrb[0].mxu0  ;;  %v1542_v2 = vpop.f32.mrb[0].mxu1 }
 0x30d   : > { %v9580_v10 = vadd.f32 %v7680_v63, %v1047_v1  ;;  %v9582_v3 = vadd.f32 %v7681_v0, %v1542_v2  ;;  %v7987_v5 = vpop.f32.mrb[1].mxu0  ;;  %v8053_v6 = vpop.f32.mrb[1].mxu1 }
 0x30f   : > { %v2044_v7 = vsel %vm2042_vm4, %v9580_v10, 0  ;;  %2958 = vrot.lane.b32.xlu1 %v9580_v10, %s9046_s15  ;;  %v2047_v8 = vsel %vm2042_vm4, %v9582_v3, 0 }
 0x310   : > { %v2115_v9 = vand.u32 4294901760, %v2044_v7  ;;  %v2050_v11 = vand.u32 4294901760, %v2047_v8 }
 0x312   : > { %v2116_v12 = vsub.f32 %v2044_v7, %v2115_v9  ;;  %8121 = vmatpush3.xpose.msra.mxu1 %v2050_v11  ;;  %v2127_v13 = vsub.f32 %v2047_v8, %v2050_v11 }
 0x313   : > { %2960 = vrot.lane.b32.xlu1 %v9582_v3, %s9046_s15  ;;  %8125 = vmatprep.subr.mxu1 %v9045_v22 }
 0x314   : > { %v2117_v14 = vand.u32 4294901760, %v2116_v12  ;;  %v2128_v15 = vand.u32 4294901760, %v2127_v13 }
 0x316   : > { %v2118_v16 = vsub.f32 %v2116_v12, %v2117_v14  ;;  %v2129_v17 = vsub.f32 %v2127_v13, %v2128_v15 }
 0x318   : > { %v2119_v18 = vand.u32 4294901760, %v2118_v16  ;;  %v2130_v19 = vand.u32 4294901760, %v2129_v17 }
 0x31a   : > { %8123 = vmatmul.mubr.f32.vlgmr.msra.gmra.mrb[2].mxu1 %v2119_v18 }
 0x31b   : > { %8126 = vmatpush3.xpose.msra.mxu1 %v2130_v19  ;;  %8127 = vmatprep.mubr.msk.f32.mxu1 %vm9044_vm1, %v9045_v22 }
 0x31c   : > { %8130 = vmatprep.subr.mxu1 %v9045_v22 }
 0x322   : > { %8128 = vmatmul.mubr.f32.vlgmr.msra.gmra.mrb[2].mxu1 %v2115_v9 }
 0x323   : > { %8131 = vmatpush3.xpose.msra.mxu1 %v2127_v13  ;;  %8132 = vmatprep.mubr.msk.f32.mxu1 %vm9044_vm1, %v9045_v22 }
 0x324   : > { %8135 = vmatprep.subr.mxu1 %v9045_v22 }
 0x32a   : > { %8133 = vmatmul.mubr.f32.vlgmr.msra.gmra.mrb[2].mxu1 %v2116_v12 }
 0x32b   : > { %8136 = vmatpush3.xpose.msra.mxu1 %v2050_v11  ;;  %8137 = vmatprep.mubr.msk.f32.mxu1 %vm9044_vm1, %v9045_v22 }
 0x32c   : > { %8140 = vmatprep.subr.mxu1 %v9045_v22 }
 0x332   : > { %8138 = vmatmul.mubr.f32.vlgmr.msra.gmra.mrb[2].mxu1 %v2117_v14 }
 0x333   : > { %8141 = vmatpush3.xpose.msra.mxu1 %v2128_v15  ;;  %8142 = vmatprep.mubr.msk.f32.mxu1 %vm9044_vm1, %v9045_v22 }
 0x334   : > { %8145 = vmatprep.subr.mxu1 %v9045_v22 }
 0x33a   : > { %8143 = vmatmul.mubr.f32.vlgmr.msra.gmra.mrb[2].mxu1 %v2115_v9 }
 0x33b   : > { %8146 = vmatpush3.xpose.msra.mxu1 %v2050_v11  ;;  %8147 = vmatprep.mubr.msk.f32.mxu1 %vm9044_vm1, %v9045_v22 }
 0x33c   : > { %v2037_v21 = vpop.f32.mrb[2].mxu0  ;;  %8150 = vmatprep.subr.mxu1 %v9045_v22 }
 0x33d   : > { %v9611_v24 = vadd.f32 %v7682_v20, %v2037_v21  ;;  %v8119_v25 = vpop.f32.mrb[3].mxu0 }
 0x33f   : > { %v9614_v26 = vand.u32 4294901760, %v9611_v24 }
 0x341   : > { %v2589_v63 = vsub.f32 %v9611_v24, %v9614_v26 }
 0x342   : > { %8148 = vmatmul.mubr.f32.vlgmr.msra.gmra.mrb[2].mxu1 %v2115_v9 }
 0x343   : > { %8151 = vmatpush3.msra.mxu1 %v9614_v26  ;;  %8152 = vmatprep.mubr.msk.f32.mxu1 %vm9044_vm1, %v9045_v22  ;;  %v2590_v2 = vand.u32 4294901760, %v2589_v63 }
 0x344   : > { %8155 = vmatprep.subr.mxu1 %v9045_v22 }
 0x345   : > { %v2591_v7 = vsub.f32 %v2589_v63, %v2590_v2 }
 0x347   : > { %v2592_v11 = vand.u32 4294901760, %v2591_v7 }
 0x381   : > { %v2959_v28 = vpop.permute.xlu1 %2958 }
 0x382   : > { %v2962_v29 = vsel %vm2042_vm4, %v2959_v28, 0 }
 0x383   : > { %v3032_v31 = vand.u32 4294901760, %v2962_v29 }
 0x385   : > { %v3033_v32 = vsub.f32 %v2962_v29, %v3032_v31  ;;  %v2961_v33 = vpop.permute.xlu1 %2960 }
 0x386   : > { %v2964_v4 = vsel %vm2042_vm4, %v2961_v33, 0 }
 0x387   : > { %v3034_v35 = vand.u32 4294901760, %v3033_v32  ;;  %v2967_v36 = vand.u32 4294901760, %v2964_v4 }
 0x389   : > { %v3035_v37 = vsub.f32 %v3033_v32, %v3034_v35  ;;  %v3044_v38 = vsub.f32 %v2964_v4, %v2967_v36  ;;  %8181 = vmatpush3.xpose.msra.mxu0 %v2967_v36 }
 0x38a   : > { %8185 = vmatprep.subr.mxu0 %v9045_v22 }
 0x38b   : > { %v3036_v39 = vand.u32 4294901760, %v3035_v37  ;;  %v3045_v40 = vand.u32 4294901760, %v3044_v38 }
 0x38d   : > { %v3046_v41 = vsub.f32 %v3044_v38, %v3045_v40  ;;  %8183 = vmatmul.mubr.f32.vlgmr.msra.gmra.mrb[4].mxu0 %v3036_v39 }
 0x38e   : > { %8187 = vmatprep.mubr.msk.f32.mxu0 %vm9044_vm1, %v9045_v22 }
 0x38f   : > { %v3047_v42 = vand.u32 4294901760, %v3046_v41 }
 0x391   : > { %8186 = vmatpush3.xpose.msra.mxu0 %v3047_v42 }
 0x392   : > { %8190 = vmatprep.subr.mxu0 %v9045_v22 }
 0x395   : > { %8188 = vmatmul.mubr.f32.vlgmr.msra.gmra.mrb[4].mxu0 %v3032_v31 }
 0x396   : > { %8191 = vmatpush3.xpose.msra.mxu0 %v3044_v38  ;;  %8192 = vmatprep.mubr.msk.f32.mxu0 %vm9044_vm1, %v9045_v22 }
 0x397   : > { %8195 = vmatprep.subr.mxu0 %v9045_v22 }
 0x39d   : > { %8193 = vmatmul.mubr.f32.vlgmr.msra.gmra.mrb[4].mxu0 %v3033_v32  ;;  %v3878_v32 = vld [vmem:[%s9990_s27 + $0x8] sm:$0xff] }
 0x39e   : > { %8196 = vmatpush3.xpose.msra.mxu0 %v2967_v36  ;;  %8197 = vmatprep.mubr.msk.f32.mxu0 %vm9044_vm1, %v9045_v22  ;;  %v3883_v33 = vand.u32 4294901760, %v3878_v32 }
 0x39f   : > { %8200 = vmatprep.subr.mxu0 %v9045_v22 }
 0x3a0   : > { %v3960_v4 = vsub.f32 %v3878_v32, %v3883_v33 }
 0x3a5   : > { %8198 = vmatmul.mubr.f32.vlgmr.msra.gmra.mrb[4].mxu0 %v3034_v35  ;;  %v3961_v35 = vand.u32 4294901760, %v3960_v4 }
 0x3a6   : > { %8201 = vmatpush3.xpose.msra.mxu0 %v3045_v40  ;;  %8202 = vmatprep.mubr.msk.f32.mxu0 %vm9044_vm1, %v9045_v22  ;;  %v2957_v40 = vld [vmem:[%s9990_s27] sm:$0xff] }
 0x3a7   : > { %8205 = vmatprep.subr.mxu0 %v9045_v22  ;;  %v4332_v41 = vand.u32 4294901760, %v2957_v40 }
 0x3a9   : > { %v9708_v42 = vsub.f32 %v2957_v40, %v4332_v41 }
 0x3ad   : > { %8203 = vmatmul.mubr.f32.vlgmr.msra.gmra.mrb[4].mxu0 %v3032_v31 }
 0x3ae   : > { %8206 = vmatpush3.xpose.msra.mxu0 %v2967_v36  ;;  %8207 = vmatprep.mubr.msk.f32.mxu0 %vm9044_vm1, %v9045_v22  ;;  %v3962_v36 = vsub.f32 %v3960_v4, %v3961_v35 }
 0x3af   : > { %8240 = vmatprep.subr.mxu0 %v9045_v22 }
 0x3b0   : > { %v3963_v37 = vand.u32 4294901760, %v3962_v36 }
 0x3b5   : > { %8208 = vmatmul.mubr.f32.vlgmr.msra.gmra.mrb[4].mxu0 %v3032_v31 }
 0x3b6   : > { %8242 = vmatprep.mubr.msk.f32.mxu0 %vm9044_vm1, %v9045_v22  ;;  %8241 = vmatpush3.msra.mxu0 %v3883_v33 }
 0x3b7   : > { %8250 = vmatprep.subr.mxu0 %v9045_v22 }
 0x415   : > { %v2491_v44 = vpop.f32.mrb[2].mxu1 }
 0x416   : > { %v2495_v45 = vmul.f32 0.35355338, %v2491_v44  ;;  %v8149_v46 = vpop.f32.mrb[3].mxu1 }
 0x418   : > { %v2496_v47 = vsel %vm2041_vm5, -1e+09, %v2495_v45 }
 0x419   : > { %v2497_v48 = vsel %vm2042_vm4, %v2496_v47, -inf }
 0x41a   : > { %2498 = vmax.xlane.f32.xlu0 %v2497_v48  ;;  %v4410_v48 = vand.u32 4294901760, %v9708_v42 }
 0x488   : > { %v3408_v49 = vpop.f32.mrb[4].mxu0 }
 0x489   : > { %v3412_v23 = vmul.f32 0.35355338, %v3408_v49  ;;  %v8209_v27 = vpop.f32.mrb[5].mxu0 }
 0x48b   : > { %v3413_v50 = vsel %vm2041_vm5, -1e+09, %v3412_v23 }
 0x48c   : > { %v3414_v51 = vsel %vm2042_vm4, %v3413_v50, -inf }
 0x48d   : > { %3415 = vmax.xlane.f32.xlu1 %v3414_v51  ;;  %v4411_v51 = vsub.f32 %v9708_v42, %v4410_v48 }
 0x49e   : > { %4779 = vrot.lane.b32.xlu1 %v9582_v3, %s9047_s29 }
 0x4a7   : > { %v2499_v52 = vpop.xlane.xlu0 %2498 }
 0x4a8   : > { %v2500_v30 = vsub.f32 %v2496_v47, %v2499_v52 }
 0x4aa   : > { %v2501_v34 = vmul.f32 1.442695, %v2500_v30 }
 0x4ac   : > { %8795 = vpow2.f32 %v2501_v34 }
 0x4b6   : > { %v8796_v53 = vpop.eup %8795 }
 0x4b7   : > { %v2503_v54 = vsel %vm2042_vm4, %v8796_v53, 0.0 }
 0x4b8   : > { %2504 = vadd.xlane.f32.xlu0 %v2503_v54 }
 0x51a   : > { %v3416_v55 = vpop.xlane.xlu1 %3415 }
 0x51b   : > { %v3417_v56 = vsub.f32 %v3413_v50, %v3416_v55 }
 0x51d   : > { %v3418_v57 = vmul.f32 1.442695, %v3417_v56 }
 0x51e   : > { %v4780_v56 = vpop.permute.xlu1 %4779 }
 0x51f   : > { %8797 = vpow2.f32 %v3418_v57 }
 0x529   : > { %v8798_v58 = vpop.eup %8797 }
 0x52a   : > { %v3420_v59 = vsel %vm2042_vm4, %v8798_v58, 0.0 }
 0x52b   : > { %3421 = vadd.xlane.f32.xlu0 %v3420_v59  ;;  %v4783_v59 = vsel %vm2042_vm4, %v4780_v56, 0 }
 0x541   : > { %3426 = vrot.lane.b32.xlu0 %v9611_v24, %s9046_s15 }
 0x545   : > { %v2505_v60 = vpop.xlane.xlu0 %2504  ;;  %4777 = vrot.lane.b32.xlu0 %v9580_v10, %s9047_s29 }
 0x546   : > { %8799 = vrcp.f32 %v2505_v60 }
 0x550   : > { %v8800_v61 = vpop.eup %8799 }
 0x551   : > { %v2507_v62 = vmul.f32 %v8800_v61, %v8796_v53  ;;  %v4412_v53 = vand.u32 4294901760, %v4411_v51  ;;  %v4786_v61 = vand.u32 4294901760, %v4783_v59 }
 0x553   : > { %v2509_v0 = vsel %vm2042_vm4, %v2507_v62, 0 }
 0x554   : > { %v2577_v1 = vand.u32 4294901760, %v2509_v0 }
 0x556   : > { %v2578_v5 = vsub.f32 %v2509_v0, %v2577_v1  ;;  %v4863_v0 = vsub.f32 %v4783_v59, %v4786_v61 }
 0x558   : > { %v2579_v6 = vand.u32 4294901760, %v2578_v5 }
 0x55a   : > { %v2580_v8 = vsub.f32 %v2578_v5, %v2579_v6 }
 0x55c   : > { %v2581_v9 = vand.u32 4294901760, %v2580_v8 }
 0x55e   : > { %8153 = vmatmul.mubr.f32.vlgmr.msra.gmra.mrb[4].mxu1 %v2581_v9 }
 0x55f   : > { %8156 = vmatpush3.msra.mxu1 %v2592_v11  ;;  %8157 = vmatprep.mubr.msk.f32.mxu1 %vm9044_vm1, %v9045_v22 }
 0x560   : > { %8160 = vmatprep.subr.mxu1 %v9045_v22 }
 0x566   : > { %8158 = vmatmul.mubr.f32.vlgmr.msra.gmra.mrb[4].mxu1 %v2577_v1 }
 0x567   : > { %8161 = vmatpush3.msra.mxu1 %v2589_v63  ;;  %8162 = vmatprep.mubr.msk.f32.mxu1 %vm9044_vm1, %v9045_v22 }
 0x568   : > { %8165 = vmatprep.subr.mxu1 %v9045_v22 }
 0x56e   : > { %8163 = vmatmul.mubr.f32.vlgmr.msra.gmra.mrb[4].mxu1 %v2578_v5 }
 0x56f   : > { %8166 = vmatpush3.msra.mxu1 %v9614_v26  ;;  %8167 = vmatprep.mubr.msk.f32.mxu1 %vm9044_vm1, %v9045_v22 }
 0x570   : > { %8170 = vmatprep.subr.mxu1 %v9045_v22 }
 0x576   : > { %8168 = vmatmul.mubr.f32.vlgmr.msra.gmra.mrb[4].mxu1 %v2579_v6 }
 0x577   : > { %8171 = vmatpush3.msra.mxu1 %v2590_v2  ;;  %8172 = vmatprep.mubr.msk.f32.mxu1 %vm9044_vm1, %v9045_v22  ;;  %v4864_v2 = vand.u32 4294901760, %v4863_v0 }
 0x578   : > { %8175 = vmatprep.subr.mxu1 %v9045_v22 }
 0x579   : > { %v4865_v6 = vsub.f32 %v4863_v0, %v4864_v2 }
 0x57b   : > { %v4866_v8 = vand.u32 4294901760, %v4865_v6 }
 0x57e   : > { %8173 = vmatmul.mubr.f32.vlgmr.msra.gmra.mrb[4].mxu1 %v2577_v1 }
 0x57f   : > { %8176 = vmatpush3.msra.mxu1 %v9614_v26  ;;  %8177 = vmatprep.mubr.msk.f32.mxu1 %vm9044_vm1, %v9045_v22 }
 0x580   : > { %8210 = vmatprep.subr.mxu1 %v9045_v22 }
 0x586   : > { %8178 = vmatmul.mubr.f32.vlgmr.msra.gmra.mrb[4].mxu1 %v2577_v1 }
 0x587   : > { %8212 = vmatprep.mubr.msk.f32.mxu1 %vm9044_vm1, %v9045_v22 }
 0x5b8   : > { %v3422_v12 = vpop.xlane.xlu0 %3421 }
 0x5b9   : > { %8801 = vrcp.f32 %v3422_v12 }
 0x5bc   : > { %v3427_v13 = vpop.permute.xlu0 %3426 }
 0x5bd   : > { %v3433_v14 = vand.u32 4294901760, %v3427_v13 }
 0x5bf   : > { %8211 = vmatpush3.msra.mxu1 %v3433_v14  ;;  %v3510_v17 = vsub.f32 %v3427_v13, %v3433_v14 }
 0x5c0   : > { %8215 = vmatprep.subr.mxu1 %v9045_v22  ;;  %v4778_v55 = vpop.permute.xlu0 %4777 }
 0x5c1   : > { %v3511_v20 = vand.u32 4294901760, %v3510_v17  ;;  %v4781_v57 = vsel %vm2042_vm4, %v4778_v55, 0 }
 0x5c2   : > { %v4851_v60 = vand.u32 4294901760, %v4781_v57 }
 0x5c3   : > { %v8802_v15 = vpop.eup %8801  ;;  %v3512_v26 = vsub.f32 %v3510_v17, %v3511_v20 }
 0x5c4   : > { %v3424_v16 = vmul.f32 %v8802_v15, %v8798_v58  ;;  %v4852_v63 = vsub.f32 %v4781_v57, %v4851_v60 }
 0x5c5   : > { %v3513_v31 = vand.u32 4294901760, %v3512_v26 }
 0x5c6   : > { %v3430_v18 = vsel %vm2042_vm4, %v3424_v16, 0  ;;  %v4853_v1 = vand.u32 4294901760, %v4852_v63 }
 0x5c7   : > { %v3498_v19 = vand.u32 4294901760, %v3430_v18 }
 0x5c8   : > { %v4854_v5 = vsub.f32 %v4852_v63, %v4853_v1 }
 0x5c9   : > { %v3499_v21 = vsub.f32 %v3430_v18, %v3498_v19 }
 0x5ca   : > { %v4855_v7 = vand.u32 4294901760, %v4854_v5 }
 0x5cb   : > { %v3500_v25 = vand.u32 4294901760, %v3499_v21 }
 0x5cd   : > { %v3501_v28 = vsub.f32 %v3499_v21, %v3500_v25 }
 0x5cf   : > { %v3502_v29 = vand.u32 4294901760, %v3501_v28 }
 0x5d1   : > { %8213 = vmatmul.mubr.f32.vlgmr.msra.gmra.mrb[6].mxu1 %v3502_v29 }
 0x5d2   : > { %8216 = vmatpush3.msra.mxu1 %v3513_v31  ;;  %8217 = vmatprep.mubr.msk.f32.mxu1 %vm9044_vm1, %v9045_v22 }
 0x5d3   : > { %8220 = vmatprep.subr.mxu1 %v9045_v22 }
 0x5d9   : > { %8218 = vmatmul.mubr.f32.vlgmr.msra.gmra.mrb[6].mxu1 %v3498_v19 }
 0x5da   : > { %8221 = vmatpush3.msra.mxu1 %v3510_v17  ;;  %8222 = vmatprep.mubr.msk.f32.mxu1 %vm9044_vm1, %v9045_v22 }
 0x5db   : > { %8225 = vmatprep.subr.mxu1 %v9045_v22 }
 0x5e1   : > { %8223 = vmatmul.mubr.f32.vlgmr.msra.gmra.mrb[6].mxu1 %v3499_v21 }
 0x5e2   : > { %8226 = vmatpush3.msra.mxu1 %v3433_v14  ;;  %8227 = vmatprep.mubr.msk.f32.mxu1 %vm9044_vm1, %v9045_v22 }
 0x5e3   : > { %8230 = vmatprep.subr.mxu1 %v9045_v22 }
 0x5e9   : > { %8228 = vmatmul.mubr.f32.vlgmr.msra.gmra.mrb[6].mxu1 %v3500_v25 }
 0x5ea   : > { %8231 = vmatpush3.msra.mxu1 %v3511_v20  ;;  %8232 = vmatprep.mubr.msk.f32.mxu1 %vm9044_vm1, %v9045_v22 }
 0x5eb   : > { %8235 = vmatprep.subr.mxu1 %v9045_v22 }
 0x5f1   : > { %8233 = vmatmul.mubr.f32.vlgmr.msra.gmra.mrb[6].mxu1 %v3498_v19 }
 0x5f2   : > { %8236 = vmatpush3.msra.mxu1 %v3433_v14  ;;  %8237 = vmatprep.mubr.msk.f32.mxu1 %vm9044_vm1, %v9045_v22 }
 0x5f3   : > { %8245 = vmatprep.subr.mxu1 %v9045_v22 }
 0x5f9   : > { %8238 = vmatmul.mubr.f32.vlgmr.msra.gmra.mrb[6].mxu1 %v3498_v19 }
 0x5fa   : > { %8247 = vmatprep.mubr.msk.f32.mxu1 %vm9044_vm1, %v9045_v22  ;;  %8246 = vmatpush3.msra.mxu1 %v3963_v37 }
 0x5fb   : > { %8255 = vmatprep.subr.mxu1 %v9045_v22 }
 0x659   : > { %v2953_v38 = vpop.f32.mrb[4].mxu1 }
 0x65a   : > { %v8179_v39 = vpop.f32.mrb[5].mxu1  ;;  %v4329_v49 = vsel %vm2042_vm4, %v2953_v38, 0 }
 0x65b   : > { %v4397_v27 = vand.u32 4294901760, %v4329_v49 }
 0x65d   : > { %v4398_v30 = vsub.f32 %v4329_v49, %v4397_v27 }
 0x65f   : > { %v4399_v54 = vand.u32 4294901760, %v4398_v30 }
 0x661   : > { %v4400_v58 = vsub.f32 %v4398_v30, %v4399_v54 }
 0x663   : > { %v4401_v62 = vand.u32 4294901760, %v4400_v58 }
 0x6cc   : > { %v3874_v44 = vpop.f32.mrb[6].mxu1 }
 0x6cd   : > { %v3880_v45 = vsel %vm2042_vm4, %v3874_v44, 0  ;;  %v8239_v46 = vpop.f32.mrb[7].mxu1 }
 0x6ce   : > { %v3948_v47 = vand.u32 4294901760, %v3880_v45 }
 0x6d0   : > { %v3949_v23 = vsub.f32 %v3880_v45, %v3948_v47  ;;  %8248 = vmatmul.mubr.f32.vlgmr.msra.gmra.mrb[8].mxu1 %v3948_v47 }
 0x6d1   : > { %8256 = vmatpush3.msra.mxu1 %v3883_v33  ;;  %8257 = vmatprep.mubr.msk.f32.mxu1 %vm9044_vm1, %v9045_v22 }
 0x6d2   : > { %v3950_v50 = vand.u32 4294901760, %v3949_v23  ;;  %8265 = vmatprep.subr.mxu1 %v9045_v22 }
 0x6d4   : > { %v3951_v52 = vsub.f32 %v3949_v23, %v3950_v50  ;;  %8258 = vmatmul.mubr.f32.vlgmr.msra.gmra.mrb[10].mxu1 %v3950_v50 }
 0x6d5   : > { %8266 = vmatpush3.msra.mxu1 %v3883_v33  ;;  %8267 = vmatprep.mubr.msk.f32.mxu1 %vm9044_vm1, %v9045_v22 }
 0x6d6   : > { %v3952_v34 = vand.u32 4294901760, %v3951_v52  ;;  %8275 = vmatprep.subr.mxu1 %v9045_v22 }
 0x6d8   : > { %8243 = vmatmul.mubr.f32.vlgmr.msra.gmra.mrb[6].mxu0 %v3952_v34  ;;  %8268 = vmatmul.mubr.f32.vlgmr.msra.gmra.mrb[12].mxu1 %v3948_v47 }
 0x6d9   : > { %8251 = vmatpush3.msra.mxu0 %v3960_v4  ;;  %8252 = vmatprep.mubr.msk.f32.mxu0 %vm9044_vm1, %v9045_v22 }
 0x6da   : > { %8276 = vmatpush3.msra.mxu1 %v4412_v53  ;;  %8277 = vmatprep.mubr.msk.f32.mxu1 %vm9044_vm1, %v9045_v22 }
 0x6db   : > { %8260 = vmatprep.subr.mxu0 %v9045_v22  ;;  %8285 = vmatprep.subr.mxu1 %v9045_v22 }
 0x6dc   : > { %8253 = vmatmul.mubr.f32.vlgmr.msra.gmra.mrb[8].mxu0 %v3949_v23  ;;  %8278 = vmatmul.mubr.f32.vlgmr.msra.gmra.mrb[14].mxu1 %v4397_v27 }
 0x6dd   : > { %8261 = vmatpush3.msra.mxu0 %v3961_v35  ;;  %8262 = vmatprep.mubr.msk.f32.mxu0 %vm9044_vm1, %v9045_v22 }
 0x6de   : > { %8286 = vmatpush3.msra.mxu1 %v4332_v41  ;;  %8287 = vmatprep.mubr.msk.f32.mxu1 %vm9044_vm1, %v9045_v22 }
 0x6df   : > { %8270 = vmatprep.subr.mxu0 %v9045_v22  ;;  %8295 = vmatprep.subr.mxu1 %v9045_v22 }
 0x6e0   : > { %8263 = vmatmul.mubr.f32.vlgmr.msra.gmra.mrb[10].mxu0 %v3948_v47  ;;  %8288 = vmatmul.mubr.f32.vlgmr.msra.gmra.mrb[16].mxu1 %v4399_v54 }
 0x6e1   : > { %8271 = vmatpush3.msra.mxu0 %v4332_v41  ;;  %8272 = vmatprep.mubr.msk.f32.mxu0 %vm9044_vm1, %v9045_v22 }
 0x6e2   : > { %8296 = vmatpush3.msra.mxu1 %v4332_v41  ;;  %8297 = vmatprep.mubr.msk.f32.mxu1 %vm9044_vm1, %v9045_v22 }
 0x6e3   : > { %8280 = vmatprep.subr.mxu0 %v9045_v22  ;;  %8330 = vmatprep.subr.mxu1 %v9045_v22 }
 0x6e4   : > { %8273 = vmatmul.mubr.f32.vlgmr.msra.gmra.mrb[12].mxu0 %v4401_v62  ;;  %8298 = vmatmul.mubr.f32.vlgmr.msra.gmra.mrb[18].mxu1 %v4397_v27 }
 0x6e5   : > { %8281 = vmatpush3.msra.mxu0 %v9708_v42  ;;  %8282 = vmatprep.mubr.msk.f32.mxu0 %vm9044_vm1, %v9045_v22 }
 0x6e6   : > { %8290 = vmatprep.subr.mxu0 %v9045_v22  ;;  %8332 = vmatprep.mubr.msk.f32.mxu1 %vm9044_vm1, %v9045_v22 }
 0x6e8   : > { %8283 = vmatmul.mubr.f32.vlgmr.msra.gmra.mrb[14].mxu0 %v4398_v30 }
 0x6e9   : > { %8291 = vmatpush3.msra.mxu0 %v4410_v48  ;;  %8292 = vmatprep.mubr.msk.f32.mxu0 %vm9044_vm1, %v9045_v22 }
 0x6ea   : > { %8300 = vmatprep.subr.mxu0 %v9045_v22 }
 0x6ec   : > { %8293 = vmatmul.mubr.f32.vlgmr.msra.gmra.mrb[16].mxu0 %v4397_v27 }
 0x6ed   : > { %8302 = vmatprep.mubr.msk.f32.mxu0 %vm9044_vm1, %v9045_v22 }
 0x6f0   : > { %8301 = vmatpush3.xpose.msra.mxu0 %v4786_v61 }
 0x6f1   : > { %8305 = vmatprep.subr.mxu0 %v9045_v22 }
 0x6f3   : > { %8303 = vmatmul.mubr.f32.vlgmr.msra.gmra.mrb[18].mxu0 %v4855_v7 }
 0x6f4   : > { %8306 = vmatpush3.xpose.msra.mxu0 %v4866_v8  ;;  %8307 = vmatprep.mubr.msk.f32.mxu0 %vm9044_vm1, %v9045_v22 }
 0x6f5   : > { %8310 = vmatprep.subr.mxu0 %v9045_v22 }
 0x6fb   : > { %8308 = vmatmul.mubr.f32.vlgmr.msra.gmra.mrb[18].mxu0 %v4851_v60 }
 0x6fc   : > { %8311 = vmatpush3.xpose.msra.mxu0 %v4863_v0  ;;  %8312 = vmatprep.mubr.msk.f32.mxu0 %vm9044_vm1, %v9045_v22 }
 0x6fd   : > { %8315 = vmatprep.subr.mxu0 %v9045_v22 }
 0x703   : > { %8313 = vmatmul.mubr.f32.vlgmr.msra.gmra.mrb[18].mxu0 %v4852_v63 }
 0x704   : > { %8316 = vmatpush3.xpose.msra.mxu0 %v4786_v61  ;;  %8317 = vmatprep.mubr.msk.f32.mxu0 %vm9044_vm1, %v9045_v22 }
 0x705   : > { %8320 = vmatprep.subr.mxu0 %v9045_v22 }
 0x70b   : > { %8318 = vmatmul.mubr.f32.vlgmr.msra.gmra.mrb[18].mxu0 %v4853_v1 }
 0x70c   : > { %8321 = vmatpush3.xpose.msra.mxu0 %v4864_v2  ;;  %8322 = vmatprep.mubr.msk.f32.mxu0 %vm9044_vm1, %v9045_v22 }
 0x70d   : > { %8325 = vmatprep.subr.mxu0 %v9045_v22 }
 0x713   : > { %8323 = vmatmul.mubr.f32.vlgmr.msra.gmra.mrb[18].mxu0 %v4851_v60 }
 0x714   : > { %8326 = vmatpush3.xpose.msra.mxu0 %v4786_v61  ;;  %8327 = vmatprep.mubr.msk.f32.mxu0 %vm9044_vm1, %v9045_v22 }
 0x715   : > { %8360 = vmatprep.subr.mxu0 %v9045_v22 }
 0x71b   : > { %8328 = vmatmul.mubr.f32.vlgmr.msra.gmra.mrb[18].mxu0 %v4851_v60 }
 0x71c   : > { %8362 = vmatprep.mubr.msk.f32.mxu0 %vm9044_vm1, %v9045_v22 }
 0x7a3   : > { %v4030_v9 = vpop.f32.mrb[8].mxu1 }
 0x7a4   : > { %v8249_v11 = vpop.f32.mrb[9].mxu1 }
 0x7a7   : > { %v4178_v12 = vpop.f32.mrb[10].mxu1 }
 0x7a8   : > { %v8259_v13 = vpop.f32.mrb[11].mxu1 }
 0x7ab   : > { %v3954_v14 = vpop.f32.mrb[6].mxu0  ;;  %v4324_v15 = vpop.f32.mrb[12].mxu1 }
 0x7ac   : > { %v4031_v16 = vadd.f32 %v4030_v9, %v3954_v14  ;;  %v8244_v17 = vpop.f32.mrb[7].mxu0  ;;  %v8269_v18 = vpop.f32.mrb[13].mxu1 }
 0x7af   : > { %v4104_v19 = vpop.f32.mrb[8].mxu0  ;;  %v4479_v20 = vpop.f32.mrb[14].mxu1 }
 0x7b0   : > { %v4105_v21 = vadd.f32 %v4104_v19, %v4031_v16  ;;  %v8254_v25 = vpop.f32.mrb[9].mxu0  ;;  %v8279_v26 = vpop.f32.mrb[15].mxu1 }
 0x7b2   : > { %v4179_v28 = vadd.f32 %v4178_v12, %v4105_v21 }
 0x7b3   : > { %v4252_v29 = vpop.f32.mrb[10].mxu0  ;;  %v4627_v31 = vpop.f32.mrb[16].mxu1 }
 0x7b4   : > { %v4253_v32 = vadd.f32 %v4252_v29, %v4179_v28  ;;  %v8264_v33 = vpop.f32.mrb[11].mxu0  ;;  %v8289_v4 = vpop.f32.mrb[17].mxu1 }
 0x7b6   : > { %v4325_v35 = vadd.f32 %v4324_v15, %v4253_v32 }
 0x7b7   : > { %v4403_v36 = vpop.f32.mrb[12].mxu0  ;;  %v4773_v37 = vpop.f32.mrb[18].mxu1 }
 0x7b8   : > { %v4404_v38 = vadd.f32 %v4403_v36, %v4325_v35  ;;  %v8274_v39 = vpop.f32.mrb[13].mxu0  ;;  %v8299_v40 = vpop.f32.mrb[19].mxu1 }
 0x7ba   : > { %v4480_v41 = vadd.f32 %v4479_v20, %v4404_v38 }
 0x7bb   : > { %v4553_v42 = vpop.f32.mrb[14].mxu0 }
 0x7bc   : > { %v4554_v44 = vadd.f32 %v4553_v42, %v4480_v41  ;;  %v8284_v45 = vpop.f32.mrb[15].mxu0 }
 0x7be   : > { %v4628_v46 = vadd.f32 %v4627_v31, %v4554_v44 }
 0x7bf   : > { %v4701_v47 = vpop.f32.mrb[16].mxu0 }
 0x7c0   : > { %v4702_v48 = vadd.f32 %v4701_v47, %v4628_v46  ;;  %v8294_v49 = vpop.f32.mrb[17].mxu0 }
 0x7c2   : > { %v9769_v23 = vadd.f32 %v4773_v37, %v4702_v48 }
 0x7ee   : > { %v5227_v27 = vpop.f32.mrb[18].mxu0 }
 0x7ef   : > { %v5231_v50 = vmul.f32 0.35355338, %v5227_v27  ;;  %v8329_v51 = vpop.f32.mrb[19].mxu0 }
 0x7f1   : > { %v5232_v52 = vsel %vm2041_vm5, -1e+09, %v5231_v50 }
 0x7f2   : > { %v5233_v30 = vsel %vm2042_vm4, %v5232_v52, -inf }
 0x7f3   : > { %5234 = vmax.xlane.f32.xlu0 %v5233_v30 }
 0x809   : > { %5244 = vrot.lane.b32.xlu0 %v9611_v24, %s9047_s29  ;;  %s508_s29 = scalar_lea.vmem [#allocation11], %s9346_s8  ;;  %s9049_s8 = smov [#allocation11]  }
 0x80a   : > { %s7540_s13 = sshll.u32 %s508_s29, 4  ;;  %s9899_s13 = int_to_ptr.vmem [resolvable:$true] %s7540_s13 }
 0x80b   : > { %s8956_s25 = scalar_lea.vmem %s9899_s13, 128 }
 0x80c   : > { %p8957_p12 = scmp.ne.s32.totalorder %s9899_s13, %s8956_s25 }
 0x80d   : > { %6149 = vrot.lane.b32.xlu0 %v9582_v3, %s9048_s26 }
 0x80e   : > { %p8958_p2 = pnand %p8957_p12, %p9993_p1 }
 0x810   : > { %p8959_p4 = pneg %p8958_p2 }
 0x880   : > { %v5235_v34 = vpop.xlane.xlu0 %5234 }
 0x881   : > { %v5236_v53 = vsub.f32 %v5232_v52, %v5235_v34 }
 0x883   : > { %v5237_v54 = vmul.f32 1.442695, %v5236_v53 }
 0x884   : > { %v5245_v55 = vpop.permute.xlu0 %5244 }
 0x885   : > { %8803 = vpow2.f32 %v5237_v54  ;;  %v5251_v56 = vand.u32 4294901760, %v5245_v55 }
 0x887   : > { %8331 = vmatpush3.msra.mxu1 %v5251_v56  ;;  %v5328_v3 = vsub.f32 %v5245_v55, %v5251_v56 }
 0x888   : > { %8335 = vmatprep.subr.mxu1 %v9045_v22  ;;  %v6150_v20 = vpop.permute.xlu0 %6149 }
 0x889   : > { %v5329_v0 = vand.u32 4294901760, %v5328_v3  ;;  %v6153_v28 = vsel %vm2042_vm4, %v6150_v20, 0 }
 0x88a   : > { %v6156_v32 = vand.u32 4294901760, %v6153_v28 }
 0x88b   : > { %v5330_v5 = vsub.f32 %v5328_v3, %v5329_v0 }
 0x88c   : > { %v6233_v35 = vsub.f32 %v6153_v28, %v6156_v32 }
 0x88d   : > { %v5331_v8 = vand.u32 4294901760, %v5330_v5 }
 0x88e   : > { %v6234_v37 = vand.u32 4294901760, %v6233_v35 }
 0x88f   : > { %v8804_v57 = vpop.eup %8803 }
 0x890   : > { %v5239_v58 = vsel %vm2042_vm4, %v8804_v57, 0.0  ;;  %v6235_v39 = vsub.f32 %v6233_v35, %v6234_v37 }
 0x891   : > { %5240 = vadd.xlane.f32.xlu1 %v5239_v58 }
 0x892   : > { %v6236_v41 = vand.u32 4294901760, %v6235_v39 }
 0x8a2   : > { %6147 = vrot.lane.b32.xlu1 %v9580_v10, %s9048_s26  ;;  %v5696_v10 = vld [vmem:[%s9990_s27 + $0x10] sm:$0xff] }
 0x8a3   : > { %v5701_v9 = vand.u32 4294901760, %v5696_v10 }
 0x8a5   : > { %v5778_v11 = vsub.f32 %v5696_v10, %v5701_v9  ;;  %8361 = vmatpush3.msra.mxu0 %v5701_v9 }
 0x8a6   : > { %8370 = vmatprep.subr.mxu0 %v9045_v22 }
 0x8a7   : > { %v5779_v12 = vand.u32 4294901760, %v5778_v11 }
 0x8a9   : > { %v5780_v13 = vsub.f32 %v5778_v11, %v5779_v12 }
 0x8ab   : > { %v5781_v14 = vand.u32 4294901760, %v5780_v13 }
 0x91e   : > { %v5241_v59 = vpop.xlane.xlu1 %5240 }
 0x91f   : > { %8805 = vrcp.f32 %v5241_v59 }
 0x922   : > { %v6148_v19 = vpop.permute.xlu1 %6147 }
 0x923   : > { %v6151_v25 = vsel %vm2042_vm4, %v6148_v19, 0 }
 0x924   : > { %v6221_v31 = vand.u32 4294901760, %v6151_v25 }
 0x926   : > { %v6222_v4 = vsub.f32 %v6151_v25, %v6221_v31 }
 0x928   : > { %v6223_v36 = vand.u32 4294901760, %v6222_v4 }
 0x929   : > { %v8806_v60 = vpop.eup %8805 }
 0x92a   : > { %v5243_v61 = vmul.f32 %v8806_v60, %v8804_v57  ;;  %v6224_v38 = vsub.f32 %v6222_v4, %v6223_v36 }
 0x92c   : > { %v5248_v62 = vsel %vm2042_vm4, %v5243_v61, 0  ;;  %v6225_v40 = vand.u32 4294901760, %v6224_v38 }
 0x92d   : > { %v5316_v63 = vand.u32 4294901760, %v5248_v62 }
 0x92f   : > { %v5317_v1 = vsub.f32 %v5248_v62, %v5316_v63 }
 0x931   : > { %v5318_v2 = vand.u32 4294901760, %v5317_v1 }
 0x933   : > { %v5319_v6 = vsub.f32 %v5317_v1, %v5318_v2 }
 0x935   : > { %v5320_v7 = vand.u32 4294901760, %v5319_v6 }
 0x937   : > { %8333 = vmatmul.mubr.f32.vlgmr.msra.gmra.mrb[20].mxu1 %v5320_v7 }
 0x938   : > { %8336 = vmatpush3.msra.mxu1 %v5331_v8  ;;  %8337 = vmatprep.mubr.msk.f32.mxu1 %vm9044_vm1, %v9045_v22 }
 0x939   : > { %8340 = vmatprep.subr.mxu1 %v9045_v22 }
 0x93f   : > { %8338 = vmatmul.mubr.f32.vlgmr.msra.gmra.mrb[20].mxu1 %v5316_v63 }
 0x940   : > { %8341 = vmatpush3.msra.mxu1 %v5328_v3  ;;  %8342 = vmatprep.mubr.msk.f32.mxu1 %vm9044_vm1, %v9045_v22 }
 0x941   : > { %8345 = vmatprep.subr.mxu1 %v9045_v22 }
 0x947   : > { %8343 = vmatmul.mubr.f32.vlgmr.msra.gmra.mrb[20].mxu1 %v5317_v1 }
 0x948   : > { %8346 = vmatpush3.msra.mxu1 %v5251_v56  ;;  %8347 = vmatprep.mubr.msk.f32.mxu1 %vm9044_vm1, %v9045_v22 }
 0x949   : > { %8350 = vmatprep.subr.mxu1 %v9045_v22 }
 0x94f   : > { %8348 = vmatmul.mubr.f32.vlgmr.msra.gmra.mrb[20].mxu1 %v5318_v2 }
 0x950   : > { %8351 = vmatpush3.msra.mxu1 %v5329_v0  ;;  %8352 = vmatprep.mubr.msk.f32.mxu1 %vm9044_vm1, %v9045_v22 }
 0x951   : > { %8355 = vmatprep.subr.mxu1 %v9045_v22 }
 0x957   : > { %8353 = vmatmul.mubr.f32.vlgmr.msra.gmra.mrb[20].mxu1 %v5316_v63 }
 0x958   : > { %8356 = vmatpush3.msra.mxu1 %v5251_v56  ;;  %8357 = vmatprep.mubr.msk.f32.mxu1 %vm9044_vm1, %v9045_v22 }
 0x959   : > { %8365 = vmatprep.subr.mxu1 %v9045_v22 }
 0x95f   : > { %8358 = vmatmul.mubr.f32.vlgmr.msra.gmra.mrb[20].mxu1 %v5316_v63 }
 0x960   : > { %8367 = vmatprep.mubr.msk.f32.mxu1 %vm9044_vm1, %v9045_v22  ;;  %8366 = vmatpush3.msra.mxu1 %v5781_v14 }
 0x961   : > { %8375 = vmatprep.subr.mxu1 %v9045_v22 }
 0xa32   : > { %v5692_v15 = vpop.f32.mrb[20].mxu1 }
 0xa33   : > { %v5698_v16 = vsel %vm2042_vm4, %v5692_v15, 0  ;;  %v8359_v17 = vpop.f32.mrb[21].mxu1 }
 0xa34   : > { %v5766_v18 = vand.u32 4294901760, %v5698_v16  ;;  %v7066_v17 = vld [vmem:[%s9990_s27 + $0x18] sm:$0xff] }
 0xa36   : > { %v5767_v21 = vsub.f32 %v5698_v16, %v5766_v18  ;;  %8368 = vmatmul.mubr.f32.vlgmr.msra.gmra.mrb[22].mxu1 %v5766_v18 }
 0xa37   : > { %8376 = vmatpush3.msra.mxu1 %v5701_v9  ;;  %8377 = vmatprep.mubr.msk.f32.mxu1 %vm9044_vm1, %v9045_v22 }
 0xa38   : > { %v5768_v26 = vand.u32 4294901760, %v5767_v21  ;;  %8385 = vmatprep.subr.mxu1 %v9045_v22 }
 0xa3a   : > { %v5769_v29 = vsub.f32 %v5767_v21, %v5768_v26  ;;  %8378 = vmatmul.mubr.f32.vlgmr.msra.gmra.mrb[24].mxu1 %v5768_v26 }
 0xa3b   : > { %8386 = vmatpush3.msra.mxu1 %v5701_v9  ;;  %8387 = vmatprep.mubr.msk.f32.mxu1 %vm9044_vm1, %v9045_v22 }
 0xa3c   : > { %v5770_v33 = vand.u32 4294901760, %v5769_v29  ;;  %8420 = vmatprep.subr.mxu1 %v9045_v22 }
 0xa3e   : > { %8363 = vmatmul.mubr.f32.vlgmr.msra.gmra.mrb[20].mxu0 %v5770_v33  ;;  %8388 = vmatmul.mubr.f32.vlgmr.msra.gmra.mrb[26].mxu1 %v5766_v18 }
 0xa3f   : > { %8371 = vmatpush3.msra.mxu0 %v5778_v11  ;;  %8372 = vmatprep.mubr.msk.f32.mxu0 %vm9044_vm1, %v9045_v22 }
 0xa40   : > { %8380 = vmatprep.subr.mxu0 %v9045_v22  ;;  %8422 = vmatprep.mubr.msk.f32.mxu1 %vm9044_vm1, %v9045_v22 }
 0xa42   : > { %8373 = vmatmul.mubr.f32.vlgmr.msra.gmra.mrb[22].mxu0 %v5767_v21 }
 0xa43   : > { %8381 = vmatpush3.msra.mxu0 %v5779_v12  ;;  %8382 = vmatprep.mubr.msk.f32.mxu0 %vm9044_vm1, %v9045_v22 }
 0xa44   : > { %8390 = vmatprep.subr.mxu0 %v9045_v22 }
 0xa46   : > { %8383 = vmatmul.mubr.f32.vlgmr.msra.gmra.mrb[24].mxu0 %v5766_v18  ;;  %v7071_v18 = vand.u32 4294901760, %v7066_v17 }
 0xa47   : > { %8392 = vmatprep.mubr.msk.f32.mxu0 %vm9044_vm1, %v9045_v22 }
 0xa48   : > { %v7148_v19 = vsub.f32 %v7066_v17, %v7071_v18 }
 0xa4a   : > { %8391 = vmatpush3.xpose.msra.mxu0 %v6156_v32  ;;  %v7149_v20 = vand.u32 4294901760, %v7148_v19 }
 0xa4b   : > { %8395 = vmatprep.subr.mxu0 %v9045_v22 }
 0xa4c   : > { %v7150_v21 = vsub.f32 %v7148_v19, %v7149_v20 }
 0xa4d   : > { %8393 = vmatmul.mubr.f32.vlgmr.msra.gmra.mrb[26].mxu0 %v6225_v40 }
 0xa4e   : > { %8396 = vmatpush3.xpose.msra.mxu0 %v6236_v41  ;;  %8397 = vmatprep.mubr.msk.f32.mxu0 %vm9044_vm1, %v9045_v22  ;;  %v7151_v25 = vand.u32 4294901760, %v7150_v21 }
 0xa4f   : > { %8400 = vmatprep.subr.mxu0 %v9045_v22 }
 0xa55   : > { %8398 = vmatmul.mubr.f32.vlgmr.msra.gmra.mrb[26].mxu0 %v6221_v31 }
 0xa56   : > { %8401 = vmatpush3.xpose.msra.mxu0 %v6233_v35  ;;  %8402 = vmatprep.mubr.msk.f32.mxu0 %vm9044_vm1, %v9045_v22 }
 0xa57   : > { %8405 = vmatprep.subr.mxu0 %v9045_v22 }
 0xa5d   : > { %8403 = vmatmul.mubr.f32.vlgmr.msra.gmra.mrb[26].mxu0 %v6222_v4 }
 0xa5e   : > { %8406 = vmatpush3.xpose.msra.mxu0 %v6156_v32  ;;  %8407 = vmatprep.mubr.msk.f32.mxu0 %vm9044_vm1, %v9045_v22 }
 0xa5f   : > { %8410 = vmatprep.subr.mxu0 %v9045_v22 }
 0xa65   : > { %8408 = vmatmul.mubr.f32.vlgmr.msra.gmra.mrb[26].mxu0 %v6223_v36 }
 0xa66   : > { %8411 = vmatpush3.xpose.msra.mxu0 %v6234_v37  ;;  %8412 = vmatprep.mubr.msk.f32.mxu0 %vm9044_vm1, %v9045_v22 }
 0xa67   : > { %8415 = vmatprep.subr.mxu0 %v9045_v22 }
 0xa6d   : > { %8413 = vmatmul.mubr.f32.vlgmr.msra.gmra.mrb[26].mxu0 %v6221_v31 }
 0xa6e   : > { %8416 = vmatpush3.xpose.msra.mxu0 %v6156_v32  ;;  %8417 = vmatprep.mubr.msk.f32.mxu0 %vm9044_vm1, %v9045_v22 }
 0xa6f   : > { %8450 = vmatprep.subr.mxu0 %v9045_v22 }
 0xa75   : > { %8418 = vmatmul.mubr.f32.vlgmr.msra.gmra.mrb[26].mxu0 %v6221_v31 }
 0xa76   : > { %8452 = vmatprep.mubr.msk.f32.mxu0 %vm9044_vm1, %v9045_v22  ;;  %8451 = vmatpush3.msra.mxu0 %v7071_v18 }
 0xa77   : > { %8460 = vmatprep.subr.mxu0 %v9045_v22 }
 0xb09   : > { %v5848_v42 = vpop.f32.mrb[22].mxu1 }
 0xb0a   : > { %v8369_v44 = vpop.f32.mrb[23].mxu1 }
 0xb0d   : > { %v5996_v45 = vpop.f32.mrb[24].mxu1 }
 0xb0e   : > { %v8379_v46 = vpop.f32.mrb[25].mxu1 }
 0xb11   : > { %v5772_v47 = vpop.f32.mrb[20].mxu0  ;;  %v6142_v48 = vpop.f32.mrb[26].mxu1 }
 0xb12   : > { %v5849_v49 = vadd.f32 %v5848_v42, %v5772_v47  ;;  %v8364_v27 = vpop.f32.mrb[21].mxu0  ;;  %v8389_v50 = vpop.f32.mrb[27].mxu1 }
 0xb15   : > { %v5922_v51 = vpop.f32.mrb[22].mxu0 }
 0xb16   : > { %v5923_v52 = vadd.f32 %v5922_v51, %v5849_v49  ;;  %v8374_v30 = vpop.f32.mrb[23].mxu0 }
 0xb18   : > { %v5997_v34 = vadd.f32 %v5996_v45, %v5923_v52  ;;  %v7683_v52 = vld [vmem:[%s9991_s10] ss:$0 sm:$0xff] }
 0xb19   : > { %v6070_v53 = vpop.f32.mrb[24].mxu0 }
 0xb1a   : > { %v6071_v54 = vadd.f32 %v6070_v53, %v5997_v34  ;;  %v8384_v55 = vpop.f32.mrb[25].mxu0  ;;  %v8811_v53 = vld [vmem:[%s442_s17] sm:$0xff]  ;;  %s8960_s17 = sshll.u32 %s9049_s8, 4  ;;  %s8961_s17 = int_to_ptr.vmem [resolvable:$false] %s8960_s17 }
 0xb1b   : > { %s8962_s16 = scalar_lea.vmem %s8961_s17, 256  ;;  %p8963_p0 = scmp.lt.s32.totalorder %s9899_s13, %s8961_s17 }
 0xb1c   : > { %v6143_v56 = vadd.f32 %v6142_v48, %v6071_v54  ;;  %p8964_p8 = scmp.lt.s32.totalorder %s8962_s16, %s8956_s25 }
 0xb1e   : > { %v9843_v57 = vadd.f32 %v6143_v56, %v9769_v23  ;;  %p8965_p6 = por %p8964_p8, %p8963_p0 }
 0xb20   : > { %p8966_p10 = pnand %p8965_p6, %p8959_p4 }
 0xb48   : > { %v6597_v58 = vpop.f32.mrb[26].mxu0 }
 0xb49   : > { %v6601_v59 = vmul.f32 0.35355338, %v6597_v58  ;;  %v8419_v60 = vpop.f32.mrb[27].mxu0 }
 0xb4b   : > { %v6602_v3 = vsel %vm2041_vm5, -1e+09, %v6601_v59 }
 0xb4c   : > { %v6603_v61 = vsel %vm2042_vm4, %v6602_v3, -inf }
 0xb4d   : > { %6604 = vmax.xlane.f32.xlu0 %v6603_v61 }
 0xb63   : > { %6614 = vrot.lane.b32.xlu0 %v9611_v24, %s9048_s26  ;;  %s9897_s26 = scalar_lea.hbm %s9992_s19, %s7685_s20 }
 0xbda   : > { %v6605_v62 = vpop.xlane.xlu0 %6604 }
 0xbdb   : > { %v6606_v63 = vsub.f32 %v6602_v3, %v6605_v62 }
 0xbdd   : > { %v6607_v0 = vmul.f32 1.442695, %v6606_v63 }
 0xbde   : > { %v6615_v1 = vpop.permute.xlu0 %6614 }
 0xbdf   : > { %8807 = vpow2.f32 %v6607_v0  ;;  %v6621_v2 = vand.u32 4294901760, %v6615_v1 }
 0xbe1   : > { %8421 = vmatpush3.msra.mxu1 %v6621_v2  ;;  %v6698_v7 = vsub.f32 %v6615_v1, %v6621_v2 }
 0xbe2   : > { %8425 = vmatprep.subr.mxu1 %v9045_v22 }
 0xbe3   : > { %v6699_v9 = vand.u32 4294901760, %v6698_v7 }
 0xbe5   : > { %v6700_v13 = vsub.f32 %v6698_v7, %v6699_v9 }
 0xbe7   : > { %v6701_v16 = vand.u32 4294901760, %v6700_v13 }
 0xbe9   : > { %v8808_v23 = vpop.eup %8807 }
 0xbea   : > { %v6609_v5 = vsel %vm2042_vm4, %v8808_v23, 0.0 }
 0xbeb   : > { %6610 = vadd.xlane.f32.xlu1 %v6609_v5 }
 0xc78   : > { %v6611_v43 = vpop.xlane.xlu1 %6610 }
 0xc79   : > { %8809 = vrcp.f32 %v6611_v43 }
 0xc83   : > { %v8810_v6 = vpop.eup %8809 }
 0xc84   : > { %v6613_v8 = vmul.f32 %v8810_v6, %v8808_v23 }
 0xc86   : > { %v6618_v24 = vsel %vm2042_vm4, %v6613_v8, 0 }
 0xc87   : > { %v6686_v10 = vand.u32 4294901760, %v6618_v24 }
 0xc89   : > { %v6687_v11 = vsub.f32 %v6618_v24, %v6686_v10 }
 0xc8b   : > { %v6688_v12 = vand.u32 4294901760, %v6687_v11 }
 0xc8d   : > { %v6689_v14 = vsub.f32 %v6687_v11, %v6688_v12 }
 0xc8f   : > { %v6690_v15 = vand.u32 4294901760, %v6689_v14 }
 0xc91   : > { %8423 = vmatmul.mubr.f32.vlgmr.msra.gmra.mrb[28].mxu1 %v6690_v15 }
 0xc92   : > { %8426 = vmatpush3.msra.mxu1 %v6701_v16  ;;  %8427 = vmatprep.mubr.msk.f32.mxu1 %vm9044_vm1, %v9045_v22 }
 0xc93   : > { %8430 = vmatprep.subr.mxu1 %v9045_v22 }
 0xc99   : > { %8428 = vmatmul.mubr.f32.vlgmr.msra.gmra.mrb[28].mxu1 %v6686_v10 }
 0xc9a   : > { %8431 = vmatpush3.msra.mxu1 %v6698_v7  ;;  %8432 = vmatprep.mubr.msk.f32.mxu1 %vm9044_vm1, %v9045_v22 }
 0xc9b   : > { %8435 = vmatprep.subr.mxu1 %v9045_v22 }
 0xca1   : > { %8433 = vmatmul.mubr.f32.vlgmr.msra.gmra.mrb[28].mxu1 %v6687_v11 }
 0xca2   : > { %8436 = vmatpush3.msra.mxu1 %v6621_v2  ;;  %8437 = vmatprep.mubr.msk.f32.mxu1 %vm9044_vm1, %v9045_v22 }
 0xca3   : > { %8440 = vmatprep.subr.mxu1 %v9045_v22 }
 0xca9   : > { %8438 = vmatmul.mubr.f32.vlgmr.msra.gmra.mrb[28].mxu1 %v6688_v12 }
 0xcaa   : > { %8441 = vmatpush3.msra.mxu1 %v6699_v9  ;;  %8442 = vmatprep.mubr.msk.f32.mxu1 %vm9044_vm1, %v9045_v22 }
 0xcab   : > { %8445 = vmatprep.subr.mxu1 %v9045_v22 }
 0xcb1   : > { %8443 = vmatmul.mubr.f32.vlgmr.msra.gmra.mrb[28].mxu1 %v6686_v10 }
 0xcb2   : > { %8446 = vmatpush3.msra.mxu1 %v6621_v2  ;;  %8447 = vmatprep.mubr.msk.f32.mxu1 %vm9044_vm1, %v9045_v22 }
 0xcb3   : > { %8455 = vmatprep.subr.mxu1 %v9045_v22 }
 0xcb9   : > { %8448 = vmatmul.mubr.f32.vlgmr.msra.gmra.mrb[28].mxu1 %v6686_v10 }
 0xcba   : > { %8457 = vmatprep.mubr.msk.f32.mxu1 %vm9044_vm1, %v9045_v22  ;;  %8456 = vmatpush3.msra.mxu1 %v7151_v25 }
 0xcbb   : > { %8465 = vmatprep.subr.mxu1 %v9045_v22 }
 0xd8c   : > { %v7062_v26 = vpop.f32.mrb[28].mxu1 }
 0xd8d   : > { %v7068_v28 = vsel %vm2042_vm4, %v7062_v26, 0  ;;  %v8449_v29 = vpop.f32.mrb[29].mxu1 }
 0xd8e   : > { %v7136_v31 = vand.u32 4294901760, %v7068_v28 }
 0xd90   : > { %v7137_v32 = vsub.f32 %v7068_v28, %v7136_v31  ;;  %8458 = vmatmul.mubr.f32.vlgmr.msra.gmra.mrb[30].mxu1 %v7136_v31 }
 0xd91   : > { %8466 = vmatpush3.msra.mxu1 %v7071_v18  ;;  %8467 = vmatprep.mubr.msk.f32.mxu1 %vm9044_vm1, %v9045_v22 }
 0xd92   : > { %v7138_v33 = vand.u32 4294901760, %v7137_v32  ;;  %8475 = vmatprep.subr.mxu1 %v9045_v22 }
 0xd94   : > { %v7139_v4 = vsub.f32 %v7137_v32, %v7138_v33  ;;  %8468 = vmatmul.mubr.f32.vlgmr.msra.gmra.mrb[32].mxu1 %v7138_v33 }
 0xd95   : > { %8476 = vmatpush3.msra.mxu1 %v7071_v18  ;;  %8477 = vmatprep.mubr.msk.f32.mxu1 %vm9044_vm1, %v9045_v22 }
 0xd96   : > { %v7140_v35 = vand.u32 4294901760, %v7139_v4 }
 0xd98   : > { %8453 = vmatmul.mubr.f32.vlgmr.msra.gmra.mrb[28].mxu0 %v7140_v35  ;;  %8478 = vmatmul.mubr.f32.vlgmr.msra.gmra.mrb[34].mxu1 %v7136_v31 }
 0xd99   : > { %8461 = vmatpush3.msra.mxu0 %v7148_v19  ;;  %8462 = vmatprep.mubr.msk.f32.mxu0 %vm9044_vm1, %v9045_v22 }
 0xd9a   : > { %8470 = vmatprep.subr.mxu0 %v9045_v22 }
 0xd9c   : > { %8463 = vmatmul.mubr.f32.vlgmr.msra.gmra.mrb[30].mxu0 %v7137_v32 }
 0xd9d   : > { %8471 = vmatpush3.msra.mxu0 %v7149_v20  ;;  %8472 = vmatprep.mubr.msk.f32.mxu0 %vm9044_vm1, %v9045_v22 }
 0xda0   : > { %8473 = vmatmul.mubr.f32.vlgmr.msra.gmra.mrb[32].mxu0 %v7136_v31 }
 0xe63   : > { %v7218_v36 = vpop.f32.mrb[30].mxu1 }
 0xe64   : > { %v8459_v37 = vpop.f32.mrb[31].mxu1 }
 0xe67   : > { %v7366_v38 = vpop.f32.mrb[32].mxu1 }
 0xe68   : > { %v8469_v39 = vpop.f32.mrb[33].mxu1 }
 0xe6b   : > { %v7142_v40 = vpop.f32.mrb[28].mxu0  ;;  %v7512_v41 = vpop.f32.mrb[34].mxu1 }
 0xe6c   : > { %v7219_v42 = vadd.f32 %v7218_v36, %v7142_v40  ;;  %v8454_v44 = vpop.f32.mrb[29].mxu0  ;;  %v8479_v45 = vpop.f32.mrb[35].mxu1 }
 0xe6f   : > { %v7292_v46 = vpop.f32.mrb[30].mxu0 }
 0xe70   : > { %v7293_v47 = vadd.f32 %v7292_v46, %v7219_v42  ;;  %v8464_v48 = vpop.f32.mrb[31].mxu0 }
 0xe72   : > { %v7367_v49 = vadd.f32 %v7366_v38, %v7293_v47 }
 0xe73   : > { %v7440_v27 = vpop.f32.mrb[32].mxu0 }
 0xe74   : > { %v7441_v22 = vadd.f32 %v7440_v27, %v7367_v49  ;;  %v8474_v50 = vpop.f32.mrb[33].mxu0 }
 0xe76   : > { %v7513_v51 = vadd.f32 %v7512_v41, %v7441_v22 }
 0xe78   : > { %v7516_v30 = vadd.f32 %v7513_v51, %v9843_v57 }
 0xe7a   : > { %v7523_v34 = vadd.f32 %v7683_v52, %v7516_v30 }
 0xe7c   : > { %v7524_v54 = vadd.f32 %v8811_v53, %v7523_v34 }
 0xe7e   : > { %7525 = vst.msk [vmem:[%s508_s29] sm:$0xff] %vm512_vm0, %v7524_v54 }
 0xe7f   : > { %8969 = shalt.err (!%p8966_p10)
}
 0xe80   : > { %s8970_s4 = scalar_lea.hbm %s9897_s26, 128  ;;  %s8974_s15 = scalar_lea.hbm %s9992_s19, 256 }
 0xe81   : > { %p8971_p13 = scmp.ne.s32.totalorder %s9897_s26, %s8970_s4  ;;  %p8975_p9 = scmp.lt.u32.totalorder %s9897_s26, %s9992_s19 }
 0xe82   : > { %p8976_p3 = scmp.lt.u32.totalorder %s8974_s15, %s8970_s4  ;;  %p8978_p12 = scmp.lt.u32.totalorder %s8970_s4, %s9897_s26 }
 0xe83   : > { %p8972_p5 = pnand %p8971_p13, %p9993_p1 }
 0xe84   : > { %p8977_p7 = por %p8976_p3, %p8975_p9 }
 0xe85   : > { %p8973_p11 = pneg %p8972_p5 }
 0xe86   : > { %p8979_p2 = por %p8978_p12, %p8977_p7 }
 0xe88   : > { %p8980_p4 = pnand %p8979_p2, %p8973_p11 }
 0xe8a   : > { %8983 = shalt.err (!%p8980_p4)
}
 0xe8b   : > { %8717 = dma.vmem_to_hbm [thread:$0]  (%p9993_p1), %s9899_s13, 128, %s9897_s26, %s7527_s30  }
 0xe8c PF: > { %s9994_s20 = sld [smem:[#allocation17_spill]]  ;;  %s9995_s29 = sld [smem:[#allocation18_spill]] }
 0xe8d   : > { %p9997_p8 = scmp.ge.s32.totalorder %s9034_s24, 2 }
 0xe92   : > { %s7552_s14 = sand.u32 1, %s9994_s20   ;;  %p9996_p0 = scmp.ne.s32.totalorder %s9995_s29, 0 }
 0xe93   : > { %s7553_s9 = scalar_lea.sflag [#allocation4], %s7552_s14 }
 0xe94   : > { %p8737_p6 = pnand %p9997_p8, %p9996_p0 }
 0xe96   : > { %9017 = dma.done.wait (!%p8737_p6), %s7553_s9, 128  }
 0xe97   : > { %9019 = vsyncadd (!%p8737_p6), %s7553_s9, 4294967168  ;;  %s9998_s25 = smov %s9255_s21  ;;  %p29_p10 = scmp.ge.s32.totalorder %s9255_s21, 4  }
 0xe98   : > { %s9999_s21 = smov %s9026_s22  ;;  %s10000_s22 = smov %s9030_s23 }
 0xe99   : > { %s10001_s23 = smov %s9265_s11  ;;  %s10002_s24 = smov %s9998_s25 }
 0xe9a   :  { %31 = sbr.rel (!%p29_p10) target bundleno = 16 (0x10), region = 138 }
 0xea1   :  { %7558 = vsyncpa [#allocation3], 1 }
 0xea2   :  { %7560 = vsyncpa [#allocation3 + $0x1], 1 }
 0xea3   :  { %7561 = vsyncpa [#allocation6], 1 }
 0xea4   :  { %7563 = vsyncpa [#allocation6 + $0x1], 1 }
 0xea5   :  { %7564 = vsyncpa [#allocation9], 1 }
 0xea6   :  { %7565 = vsyncpa [#allocation4], 1 }
 0xea7   :  { %7567 = vsyncpa [#allocation4 + $0x1], 1 }

</bundles_post_ra>
